<compile_context>
chip_gen: v7x
topology: tpu7x:2x2x1
jax: 0.10.0
libtpu: 0.0.40
codegen_flags: <defaults>
</compile_context>

<pallas_src>
import functools

import jax
import jax.numpy as jnp
from jax.experimental import pallas as pl
from jax.experimental.pallas import tpu as pltpu

HP = 128   # each LSTM gate zero-padded to a full 128-lane block
IP = 8     # input features zero-padded to one sublane tile for the projection


def _sigmoid(x):
    # sigmoid(x) = 0.5 * tanh(x/2) + 0.5  -> a single EUP transcendental.
    return 0.5 * jnp.tanh(0.5 * x) + 0.5


def lstm_fc_kernel(x_ref, wih_ref, b_ref, whh_ref, fcw_ref, fcb_ref, out_ref):
    """Fused LSTM recurrence + final Linear.

    x_ref   : (T*B, IP)   time-major input, zero-padded features
    wih_ref : (IP, 4*HP)  W_ih^T, gate-padded columns (padding exactly zero)
    b_ref   : (1, 4*HP)   b_ih + b_hh, gate-padded (padding exactly zero)
    whh_ref : (H, 4*HP)   W_hh^T, gate-padded columns; K dim NOT padded
    fcw_ref : (H, HP)     fc.weight^T, lane-padded
    fcb_ref : (1, O)      fc.bias
    out_ref : (1, B, O)   fc(h_T), written directly (matches PyTorch fc(hidden))
    Gate order follows PyTorch: [i, f, g, o]; each gate is one 128-lane block.
    """
    B = out_ref.shape[1]
    O = out_ref.shape[2]
    T = x_ref.shape[0] // B
    H = whh_ref.shape[0]

    # ---- Input projection + bias for ALL timesteps in one matmul (off the
    # recurrence's serial chain, no HBM round trip).
    xg = (
        jnp.dot(x_ref[...], wih_ref[...], preferred_element_type=jnp.float32)
        + b_ref[...]
    )  # (T*B, 4*HP); padded gate lanes are exactly zero.

    # ---- Recurrence. h is carried UNPADDED (B, H) so the per-step dot uses the
    # real K=H contraction. c is carried gate-padded (B, HP); its padded lanes
    # stay exactly zero (f_pad=0.5 * 0 + i_pad=0.5 * g_pad=0).
    h = jnp.zeros((B, H), jnp.float32)
    c = jnp.zeros((B, HP), jnp.float32)
    for t in range(T):  # T is small & static -> fully unrolled at trace time.
        gates = xg[t * B:(t + 1) * B, :] + jnp.dot(
            h, whh_ref[...], preferred_element_type=jnp.float32)  # (B, 4*HP)
        i_g = _sigmoid(gates[:, 0:HP])
        f_g = _sigmoid(gates[:, HP:2 * HP])
        g_g = jnp.tanh(gates[:, 2 * HP:3 * HP])
        o_g = _sigmoid(gates[:, 3 * HP:4 * HP])
        c = f_g * c + i_g * g_g
        h = (o_g * jnp.tanh(c))[:, :H]

    # ---- Final Linear on the last hidden state; emit (1, B, O) directly.
    res = jnp.dot(h, fcw_ref[...], preferred_element_type=jnp.float32)  # (B, HP)
    out_ref[0] = (res[:, :O] + fcb_ref[...]).astype(out_ref.dtype)


def prepare_params(w_ih, w_hh, b_ih, b_hh, fc_w, fc_b):
    """One-time weight packing (kept out of the per-call jitted path)."""
    H4, I = w_ih.shape
    H = H4 // 4
    O = fc_w.shape[0]
    assert I <= IP and H <= HP and O <= HP

    def pad_gate_cols(m):  # (..., 4H) -> (..., 4*HP): zero-pad each gate block
        parts = jnp.split(m, 4, axis=-1)
        parts = [jnp.pad(p, [(0, 0)] * (p.ndim - 1) + [(0, HP - H)]) for p in parts]
        return jnp.concatenate(parts, axis=-1)

    wih_p = jnp.pad(pad_gate_cols(w_ih.T), ((0, IP - I), (0, 0)))   # (IP, 4*HP)
    whh_p = pad_gate_cols(w_hh.T)                                   # (H, 4*HP)
    b_p = pad_gate_cols((b_ih + b_hh).reshape(1, H4))               # (1, 4*HP)
    fcw_p = jnp.pad(fc_w.T, ((0, 0), (0, HP - O)))                  # (H, HP)
    fcb_p = fc_b.reshape(1, O)                                      # (1, O)
    return wih_p, whh_p, b_p, fcw_p, fcb_p


@jax.jit
def neural_network_forward(x, wih_p, whh_p, b_p, fcw_p, fcb_p):
    """x: (B, T, I). Returns fc(hidden) with shape (1, B, O), matching PyTorch."""
    B, T, I = x.shape
    O = fcb_p.shape[1]

    # Tiny time-major relayout (B*T*I = 64 elems) + feature zero-pad I -> IP,
    # done BEFORE the projection so nothing larger than x moves outside the kernel.
    x_tm = jnp.transpose(x, (1, 0, 2)).reshape(T * B, I)
    x_tm = jnp.pad(x_tm, ((0, 0), (0, IP - I)))

    vmem = pltpu.MemorySpace.VMEM
    return pl.pallas_call(
        lstm_fc_kernel,
        out_shape=jax.ShapeDtypeStruct((1, B, O), jnp.float32),
        in_specs=[pl.BlockSpec(memory_space=vmem)] * 6,
        out_specs=pl.BlockSpec(memory_space=vmem),
    )(x_tm, wih_p, b_p, whh_p, fcw_p, fcb_p)


def reference_forward(x, w_ih, w_hh, b_ih, b_hh, fc_w, fc_b):
    """Pure-JAX reference mirroring torch.nn.LSTM(batch_first=True) + Linear."""
    B, T, I = x.shape
    H = w_hh.shape[1]
    h = jnp.zeros((B, H), jnp.float32)
    c = jnp.zeros((B, H), jnp.float32)
    for t in range(T):
        gates = x[:, t, :] @ w_ih.T + h @ w_hh.T + b_ih + b_hh
        i_g = jax.nn.sigmoid(gates[:, 0:H])
        f_g = jax.nn.sigmoid(gates[:, H:2 * H])
        g_g = jnp.tanh(gates[:, 2 * H:3 * H])
        o_g = jax.nn.sigmoid(gates[:, 3 * H:4 * H])
        c = f_g * c + i_g * g_g
        h = o_g * jnp.tanh(c)
    hidden = h[None]                       # (1, B, H)
    return hidden @ fc_w.T + fc_b          # (1, B, O)


if __name__ == "__main__":
    INPUT, HIDDEN, OUT = 4, 64, 4
    B, T = 2, 8

    key = jax.random.PRNGKey(0)
    ks = jax.random.split(key, 8)
    bound = 1.0 / (HIDDEN ** 0.5)  # PyTorch default uniform init range

    x = jax.random.normal(ks[0], (B, T, INPUT), dtype=jnp.float32)
    w_ih = jax.random.uniform(ks[1], (4 * HIDDEN, INPUT), jnp.float32, -bound, bound)
    w_hh = jax.random.uniform(ks[2], (4 * HIDDEN, HIDDEN), jnp.float32, -bound, bound)
    b_ih = jax.random.uniform(ks[3], (4 * HIDDEN,), jnp.float32, -bound, bound)
    b_hh = jax.random.uniform(ks[4], (4 * HIDDEN,), jnp.float32, -bound, bound)
    fc_w = jax.random.uniform(ks[5], (OUT, HIDDEN), jnp.float32, -bound, bound)
    fc_b = jax.random.uniform(ks[6], (OUT,), jnp.float32, -bound, bound)

    # One-time weight packing (outside the per-call path).
    packed = prepare_params(w_ih, w_hh, b_ih, b_hh, fc_w, fc_b)
    packed = jax.block_until_ready(packed)

    out = neural_network_forward(x, *packed)
    out = jax.block_until_ready(out)

    ref = reference_forward(x, w_ih, w_hh, b_ih, b_hh, fc_w, fc_b)
    assert out.shape == (1, B, OUT), out.shape
    assert jnp.allclose(out, ref, atol=1e-5, rtol=1e-5), (out, ref)

    print("KERNEL_OK")
</pallas_src>

<mosaic_0001>
module attributes {stable_mosaic.version = 11 : i64} {
  func.func @lstm_fc_kernel(%arg0: memref<16x8xf32, #tpu.memory_space<vmem>>, %arg1: memref<8x512xf32, #tpu.memory_space<vmem>>, %arg2: memref<1x512xf32, #tpu.memory_space<vmem>>, %arg3: memref<64x512xf32, #tpu.memory_space<vmem>>, %arg4: memref<64x128xf32, #tpu.memory_space<vmem>>, %arg5: memref<1x4xf32, #tpu.memory_space<vmem>>, %arg6: memref<1x2x4xf32, #tpu.memory_space<vmem>>) attributes {dimension_semantics = [], scalar_prefetch = 0 : i64, scratch_operands = 0 : i64, tpu.core_type = #tpu.core_type<tc>} {
    %c0 = arith.constant 0 : index
    %c0_0 = arith.constant 0 : index
    %0 = vector.load %arg0[%c0, %c0_0] : memref<16x8xf32, #tpu.memory_space<vmem>>, vector<16x8xf32>
    %c0_1 = arith.constant 0 : index
    %c0_2 = arith.constant 0 : index
    %1 = vector.load %arg1[%c0_1, %c0_2] : memref<8x512xf32, #tpu.memory_space<vmem>>, vector<8x512xf32>
    %cst = arith.constant dense<0.000000e+00> : vector<16x512xf32>
    %2 = tpu.matmul %0, %1, %cst {dimension_numbers = #tpu.dot_dimension_numbers<[1], [0], [0], [1], [0, 0, 1, 1], [], []>} : vector<16x8xf32>, vector<8x512xf32>, vector<16x512xf32> -> vector<16x512xf32>
    %c0_3 = arith.constant 0 : index
    %c0_4 = arith.constant 0 : index
    %3 = vector.load %arg2[%c0_3, %c0_4] : memref<1x512xf32, #tpu.memory_space<vmem>>, vector<1x512xf32>
    %4 = vector.broadcast %3 : vector<1x512xf32> to vector<16x512xf32>
    %5 = arith.addf %2, %4 : vector<16x512xf32>
    %cst_5 = arith.constant 0.000000e+00 : f32
    %6 = vector.broadcast %cst_5 : f32 to vector<2x64xf32>
    %cst_6 = arith.constant 0.000000e+00 : f32
    %7 = vector.broadcast %cst_6 : f32 to vector<2x128xf32>
    %8 = vector.extract_strided_slice %5 {offsets = [0, 0], sizes = [2, 512], strides = [1, 1]} : vector<16x512xf32> to vector<2x512xf32>
    %c0_7 = arith.constant 0 : index
    %c0_8 = arith.constant 0 : index
    %9 = vector.load %arg3[%c0_7, %c0_8] : memref<64x512xf32, #tpu.memory_space<vmem>>, vector<64x512xf32>
    %cst_9 = arith.constant dense<0.000000e+00> : vector<2x512xf32>
    %10 = tpu.matmul %6, %9, %cst_9 {dimension_numbers = #tpu.dot_dimension_numbers<[1], [0], [0], [1], [0, 0, 1, 1], [], []>} : vector<2x64xf32>, vector<64x512xf32>, vector<2x512xf32> -> vector<2x512xf32>
    %11 = arith.addf %8, %10 : vector<2x512xf32>
    %12 = vector.extract_strided_slice %11 {offsets = [0, 0], sizes = [2, 128], strides = [1, 1]} : vector<2x512xf32> to vector<2x128xf32>
    %cst_10 = arith.constant 5.000000e-01 : f32
    %13 = vector.broadcast %cst_10 : f32 to vector<2x128xf32>
    %14 = arith.mulf %13, %12 : vector<2x128xf32>
    %15 = math.tanh %14 : vector<2x128xf32>
    %cst_11 = arith.constant 5.000000e-01 : f32
    %16 = vector.broadcast %cst_11 : f32 to vector<2x128xf32>
    %17 = arith.mulf %16, %15 : vector<2x128xf32>
    %cst_12 = arith.constant 5.000000e-01 : f32
    %18 = vector.broadcast %cst_12 : f32 to vector<2x128xf32>
    %19 = arith.addf %17, %18 : vector<2x128xf32>
    %20 = vector.extract_strided_slice %11 {offsets = [0, 128], sizes = [2, 128], strides = [1, 1]} : vector<2x512xf32> to vector<2x128xf32>
    %cst_13 = arith.constant 5.000000e-01 : f32
    %21 = vector.broadcast %cst_13 : f32 to vector<2x128xf32>
    %22 = arith.mulf %21, %20 : vector<2x128xf32>
    %23 = math.tanh %22 : vector<2x128xf32>
    %cst_14 = arith.constant 5.000000e-01 : f32
    %24 = vector.broadcast %cst_14 : f32 to vector<2x128xf32>
    %25 = arith.mulf %24, %23 : vector<2x128xf32>
    %cst_15 = arith.constant 5.000000e-01 : f32
    %26 = vector.broadcast %cst_15 : f32 to vector<2x128xf32>
    %27 = arith.addf %25, %26 : vector<2x128xf32>
    %28 = vector.extract_strided_slice %11 {offsets = [0, 256], sizes = [2, 128], strides = [1, 1]} : vector<2x512xf32> to vector<2x128xf32>
    %29 = math.tanh %28 : vector<2x128xf32>
    %30 = vector.extract_strided_slice %11 {offsets = [0, 384], sizes = [2, 128], strides = [1, 1]} : vector<2x512xf32> to vector<2x128xf32>
    %cst_16 = arith.constant 5.000000e-01 : f32
    %31 = vector.broadcast %cst_16 : f32 to vector<2x128xf32>
    %32 = arith.mulf %31, %30 : vector<2x128xf32>
    %33 = math.tanh %32 : vector<2x128xf32>
    %cst_17 = arith.constant 5.000000e-01 : f32
    %34 = vector.broadcast %cst_17 : f32 to vector<2x128xf32>
    %35 = arith.mulf %34, %33 : vector<2x128xf32>
    %cst_18 = arith.constant 5.000000e-01 : f32
    %36 = vector.broadcast %cst_18 : f32 to vector<2x128xf32>
    %37 = arith.addf %35, %36 : vector<2x128xf32>
    %38 = arith.mulf %27, %7 : vector<2x128xf32>
    %39 = arith.mulf %19, %29 : vector<2x128xf32>
    %40 = arith.addf %38, %39 : vector<2x128xf32>
    %41 = math.tanh %40 : vector<2x128xf32>
    %42 = arith.mulf %37, %41 : vector<2x128xf32>
    %43 = vector.extract_strided_slice %42 {offsets = [0, 0], sizes = [2, 64], strides = [1, 1]} : vector<2x128xf32> to vector<2x64xf32>
    %44 = vector.extract_strided_slice %5 {offsets = [2, 0], sizes = [2, 512], strides = [1, 1]} : vector<16x512xf32> to vector<2x512xf32>
    %c0_19 = arith.constant 0 : index
    %c0_20 = arith.constant 0 : index
    %45 = vector.load %arg3[%c0_19, %c0_20] : memref<64x512xf32, #tpu.memory_space<vmem>>, vector<64x512xf32>
    %cst_21 = arith.constant dense<0.000000e+00> : vector<2x512xf32>
    %46 = tpu.matmul %43, %45, %cst_21 {dimension_numbers = #tpu.dot_dimension_numbers<[1], [0], [0], [1], [0, 0, 1, 1], [], []>} : vector<2x64xf32>, vector<64x512xf32>, vector<2x512xf32> -> vector<2x512xf32>
    %47 = arith.addf %44, %46 : vector<2x512xf32>
    %48 = vector.extract_strided_slice %47 {offsets = [0, 0], sizes = [2, 128], strides = [1, 1]} : vector<2x512xf32> to vector<2x128xf32>
    %cst_22 = arith.constant 5.000000e-01 : f32
    %49 = vector.broadcast %cst_22 : f32 to vector<2x128xf32>
    %50 = arith.mulf %49, %48 : vector<2x128xf32>
    %51 = math.tanh %50 : vector<2x128xf32>
    %cst_23 = arith.constant 5.000000e-01 : f32
    %52 = vector.broadcast %cst_23 : f32 to vector<2x128xf32>
    %53 = arith.mulf %52, %51 : vector<2x128xf32>
    %cst_24 = arith.constant 5.000000e-01 : f32
    %54 = vector.broadcast %cst_24 : f32 to vector<2x128xf32>
    %55 = arith.addf %53, %54 : vector<2x128xf32>
    %56 = vector.extract_strided_slice %47 {offsets = [0, 128], sizes = [2, 128], strides = [1, 1]} : vector<2x512xf32> to vector<2x128xf32>
    %cst_25 = arith.constant 5.000000e-01 : f32
    %57 = vector.broadcast %cst_25 : f32 to vector<2x128xf32>
    %58 = arith.mulf %57, %56 : vector<2x128xf32>
    %59 = math.tanh %58 : vector<2x128xf32>
    %cst_26 = arith.constant 5.000000e-01 : f32
    %60 = vector.broadcast %cst_26 : f32 to vector<2x128xf32>
    %61 = arith.mulf %60, %59 : vector<2x128xf32>
    %cst_27 = arith.constant 5.000000e-01 : f32
    %62 = vector.broadcast %cst_27 : f32 to vector<2x128xf32>
    %63 = arith.addf %61, %62 : vector<2x128xf32>
    %64 = vector.extract_strided_slice %47 {offsets = [0, 256], sizes = [2, 128], strides = [1, 1]} : vector<2x512xf32> to vector<2x128xf32>
    %65 = math.tanh %64 : vector<2x128xf32>
    %66 = vector.extract_strided_slice %47 {offsets = [0, 384], sizes = [2, 128], strides = [1, 1]} : vector<2x512xf32> to vector<2x128xf32>
    %cst_28 = arith.constant 5.000000e-01 : f32
    %67 = vector.broadcast %cst_28 : f32 to vector<2x128xf32>
    %68 = arith.mulf %67, %66 : vector<2x128xf32>
    %69 = math.tanh %68 : vector<2x128xf32>
    %cst_29 = arith.constant 5.000000e-01 : f32
    %70 = vector.broadcast %cst_29 : f32 to vector<2x128xf32>
    %71 = arith.mulf %70, %69 : vector<2x128xf32>
    %cst_30 = arith.constant 5.000000e-01 : f32
    %72 = vector.broadcast %cst_30 : f32 to vector<2x128xf32>
    %73 = arith.addf %71, %72 : vector<2x128xf32>
    %74 = arith.mulf %63, %40 : vector<2x128xf32>
    %75 = arith.mulf %55, %65 : vector<2x128xf32>
    %76 = arith.addf %74, %75 : vector<2x128xf32>
    %77 = math.tanh %76 : vector<2x128xf32>
    %78 = arith.mulf %73, %77 : vector<2x128xf32>
    %79 = vector.extract_strided_slice %78 {offsets = [0, 0], sizes = [2, 64], strides = [1, 1]} : vector<2x128xf32> to vector<2x64xf32>
    %80 = vector.extract_strided_slice %5 {offsets = [4, 0], sizes = [2, 512], strides = [1, 1]} : vector<16x512xf32> to vector<2x512xf32>
    %c0_31 = arith.constant 0 : index
    %c0_32 = arith.constant 0 : index
    %81 = vector.load %arg3[%c0_31, %c0_32] : memref<64x512xf32, #tpu.memory_space<vmem>>, vector<64x512xf32>
    %cst_33 = arith.constant dense<0.000000e+00> : vector<2x512xf32>
    %82 = tpu.matmul %79, %81, %cst_33 {dimension_numbers = #tpu.dot_dimension_numbers<[1], [0], [0], [1], [0, 0, 1, 1], [], []>} : vector<2x64xf32>, vector<64x512xf32>, vector<2x512xf32> -> vector<2x512xf32>
    %83 = arith.addf %80, %82 : vector<2x512xf32>
    %84 = vector.extract_strided_slice %83 {offsets = [0, 0], sizes = [2, 128], strides = [1, 1]} : vector<2x512xf32> to vector<2x128xf32>
    %cst_34 = arith.constant 5.000000e-01 : f32
    %85 = vector.broadcast %cst_34 : f32 to vector<2x128xf32>
    %86 = arith.mulf %85, %84 : vector<2x128xf32>
    %87 = math.tanh %86 : vector<2x128xf32>
    %cst_35 = arith.constant 5.000000e-01 : f32
    %88 = vector.broadcast %cst_35 : f32 to vector<2x128xf32>
    %89 = arith.mulf %88, %87 : vector<2x128xf32>
    %cst_36 = arith.constant 5.000000e-01 : f32
    %90 = vector.broadcast %cst_36 : f32 to vector<2x128xf32>
    %91 = arith.addf %89, %90 : vector<2x128xf32>
    %92 = vector.extract_strided_slice %83 {offsets = [0, 128], sizes = [2, 128], strides = [1, 1]} : vector<2x512xf32> to vector<2x128xf32>
    %cst_37 = arith.constant 5.000000e-01 : f32
    %93 = vector.broadcast %cst_37 : f32 to vector<2x128xf32>
    %94 = arith.mulf %93, %92 : vector<2x128xf32>
    %95 = math.tanh %94 : vector<2x128xf32>
    %cst_38 = arith.constant 5.000000e-01 : f32
    %96 = vector.broadcast %cst_38 : f32 to vector<2x128xf32>
    %97 = arith.mulf %96, %95 : vector<2x128xf32>
    %cst_39 = arith.constant 5.000000e-01 : f32
    %98 = vector.broadcast %cst_39 : f32 to vector<2x128xf32>
    %99 = arith.addf %97, %98 : vector<2x128xf32>
    %100 = vector.extract_strided_slice %83 {offsets = [0, 256], sizes = [2, 128], strides = [1, 1]} : vector<2x512xf32> to vector<2x128xf32>
    %101 = math.tanh %100 : vector<2x128xf32>
    %102 = vector.extract_strided_slice %83 {offsets = [0, 384], sizes = [2, 128], strides = [1, 1]} : vector<2x512xf32> to vector<2x128xf32>
    %cst_40 = arith.constant 5.000000e-01 : f32
    %103 = vector.broadcast %cst_40 : f32 to vector<2x128xf32>
    %104 = arith.mulf %103, %102 : vector<2x128xf32>
    %105 = math.tanh %104 : vector<2x128xf32>
    %cst_41 = arith.constant 5.000000e-01 : f32
    %106 = vector.broadcast %cst_41 : f32 to vector<2x128xf32>
    %107 = arith.mulf %106, %105 : vector<2x128xf32>
    %cst_42 = arith.constant 5.000000e-01 : f32
    %108 = vector.broadcast %cst_42 : f32 to vector<2x128xf32>
    %109 = arith.addf %107, %108 : vector<2x128xf32>
    %110 = arith.mulf %99, %76 : vector<2x128xf32>
    %111 = arith.mulf %91, %101 : vector<2x128xf32>
    %112 = arith.addf %110, %111 : vector<2x128xf32>
    %113 = math.tanh %112 : vector<2x128xf32>
    %114 = arith.mulf %109, %113 : vector<2x128xf32>
    %115 = vector.extract_strided_slice %114 {offsets = [0, 0], sizes = [2, 64], strides = [1, 1]} : vector<2x128xf32> to vector<2x64xf32>
    %116 = vector.extract_strided_slice %5 {offsets = [6, 0], sizes = [2, 512], strides = [1, 1]} : vector<16x512xf32> to vector<2x512xf32>
    %c0_43 = arith.constant 0 : index
    %c0_44 = arith.constant 0 : index
    %117 = vector.load %arg3[%c0_43, %c0_44] : memref<64x512xf32, #tpu.memory_space<vmem>>, vector<64x512xf32>
    %cst_45 = arith.constant dense<0.000000e+00> : vector<2x512xf32>
    %118 = tpu.matmul %115, %117, %cst_45 {dimension_numbers = #tpu.dot_dimension_numbers<[1], [0], [0], [1], [0, 0, 1, 1], [], []>} : vector<2x64xf32>, vector<64x512xf32>, vector<2x512xf32> -> vector<2x512xf32>
    %119 = arith.addf %116, %118 : vector<2x512xf32>
    %120 = vector.extract_strided_slice %119 {offsets = [0, 0], sizes = [2, 128], strides = [1, 1]} : vector<2x512xf32> to vector<2x128xf32>
    %cst_46 = arith.constant 5.000000e-01 : f32
    %121 = vector.broadcast %cst_46 : f32 to vector<2x128xf32>
    %122 = arith.mulf %121, %120 : vector<2x128xf32>
    %123 = math.tanh %122 : vector<2x128xf32>
    %cst_47 = arith.constant 5.000000e-01 : f32
    %124 = vector.broadcast %cst_47 : f32 to vector<2x128xf32>
    %125 = arith.mulf %124, %123 : vector<2x128xf32>
    %cst_48 = arith.constant 5.000000e-01 : f32
    %126 = vector.broadcast %cst_48 : f32 to vector<2x128xf32>
    %127 = arith.addf %125, %126 : vector<2x128xf32>
    %128 = vector.extract_strided_slice %119 {offsets = [0, 128], sizes = [2, 128], strides = [1, 1]} : vector<2x512xf32> to vector<2x128xf32>
    %cst_49 = arith.constant 5.000000e-01 : f32
    %129 = vector.broadcast %cst_49 : f32 to vector<2x128xf32>
    %130 = arith.mulf %129, %128 : vector<2x128xf32>
    %131 = math.tanh %130 : vector<2x128xf32>
    %cst_50 = arith.constant 5.000000e-01 : f32
    %132 = vector.broadcast %cst_50 : f32 to vector<2x128xf32>
    %133 = arith.mulf %132, %131 : vector<2x128xf32>
    %cst_51 = arith.constant 5.000000e-01 : f32
    %134 = vector.broadcast %cst_51 : f32 to vector<2x128xf32>
    %135 = arith.addf %133, %134 : vector<2x128xf32>
    %136 = vector.extract_strided_slice %119 {offsets = [0, 256], sizes = [2, 128], strides = [1, 1]} : vector<2x512xf32> to vector<2x128xf32>
    %137 = math.tanh %136 : vector<2x128xf32>
    %138 = vector.extract_strided_slice %119 {offsets = [0, 384], sizes = [2, 128], strides = [1, 1]} : vector<2x512xf32> to vector<2x128xf32>
    %cst_52 = arith.constant 5.000000e-01 : f32
    %139 = vector.broadcast %cst_52 : f32 to vector<2x128xf32>
    %140 = arith.mulf %139, %138 : vector<2x128xf32>
    %141 = math.tanh %140 : vector<2x128xf32>
    %cst_53 = arith.constant 5.000000e-01 : f32
    %142 = vector.broadcast %cst_53 : f32 to vector<2x128xf32>
    %143 = arith.mulf %142, %141 : vector<2x128xf32>
    %cst_54 = arith.constant 5.000000e-01 : f32
    %144 = vector.broadcast %cst_54 : f32 to vector<2x128xf32>
    %145 = arith.addf %143, %144 : vector<2x128xf32>
    %146 = arith.mulf %135, %112 : vector<2x128xf32>
    %147 = arith.mulf %127, %137 : vector<2x128xf32>
    %148 = arith.addf %146, %147 : vector<2x128xf32>
    %149 = math.tanh %148 : vector<2x128xf32>
    %150 = arith.mulf %145, %149 : vector<2x128xf32>
    %151 = vector.extract_strided_slice %150 {offsets = [0, 0], sizes = [2, 64], strides = [1, 1]} : vector<2x128xf32> to vector<2x64xf32>
    %152 = vector.extract_strided_slice %5 {offsets = [8, 0], sizes = [2, 512], strides = [1, 1]} : vector<16x512xf32> to vector<2x512xf32>
    %c0_55 = arith.constant 0 : index
    %c0_56 = arith.constant 0 : index
    %153 = vector.load %arg3[%c0_55, %c0_56] : memref<64x512xf32, #tpu.memory_space<vmem>>, vector<64x512xf32>
    %cst_57 = arith.constant dense<0.000000e+00> : vector<2x512xf32>
    %154 = tpu.matmul %151, %153, %cst_57 {dimension_numbers = #tpu.dot_dimension_numbers<[1], [0], [0], [1], [0, 0, 1, 1], [], []>} : vector<2x64xf32>, vector<64x512xf32>, vector<2x512xf32> -> vector<2x512xf32>
    %155 = arith.addf %152, %154 : vector<2x512xf32>
    %156 = vector.extract_strided_slice %155 {offsets = [0, 0], sizes = [2, 128], strides = [1, 1]} : vector<2x512xf32> to vector<2x128xf32>
    %cst_58 = arith.constant 5.000000e-01 : f32
    %157 = vector.broadcast %cst_58 : f32 to vector<2x128xf32>
    %158 = arith.mulf %157, %156 : vector<2x128xf32>
    %159 = math.tanh %158 : vector<2x128xf32>
    %cst_59 = arith.constant 5.000000e-01 : f32
    %160 = vector.broadcast %cst_59 : f32 to vector<2x128xf32>
    %161 = arith.mulf %160, %159 : vector<2x128xf32>
    %cst_60 = arith.constant 5.000000e-01 : f32
    %162 = vector.broadcast %cst_60 : f32 to vector<2x128xf32>
    %163 = arith.addf %161, %162 : vector<2x128xf32>
    %164 = vector.extract_strided_slice %155 {offsets = [0, 128], sizes = [2, 128], strides = [1, 1]} : vector<2x512xf32> to vector<2x128xf32>
    %cst_61 = arith.constant 5.000000e-01 : f32
    %165 = vector.broadcast %cst_61 : f32 to vector<2x128xf32>
    %166 = arith.mulf %165, %164 : vector<2x128xf32>
    %167 = math.tanh %166 : vector<2x128xf32>
    %cst_62 = arith.constant 5.000000e-01 : f32
    %168 = vector.broadcast %cst_62 : f32 to vector<2x128xf32>
    %169 = arith.mulf %168, %167 : vector<2x128xf32>
    %cst_63 = arith.constant 5.000000e-01 : f32
    %170 = vector.broadcast %cst_63 : f32 to vector<2x128xf32>
    %171 = arith.addf %169, %170 : vector<2x128xf32>
    %172 = vector.extract_strided_slice %155 {offsets = [0, 256], sizes = [2, 128], strides = [1, 1]} : vector<2x512xf32> to vector<2x128xf32>
    %173 = math.tanh %172 : vector<2x128xf32>
    %174 = vector.extract_strided_slice %155 {offsets = [0, 384], sizes = [2, 128], strides = [1, 1]} : vector<2x512xf32> to vector<2x128xf32>
    %cst_64 = arith.constant 5.000000e-01 : f32
    %175 = vector.broadcast %cst_64 : f32 to vector<2x128xf32>
    %176 = arith.mulf %175, %174 : vector<2x128xf32>
    %177 = math.tanh %176 : vector<2x128xf32>
    %cst_65 = arith.constant 5.000000e-01 : f32
    %178 = vector.broadcast %cst_65 : f32 to vector<2x128xf32>
    %179 = arith.mulf %178, %177 : vector<2x128xf32>
    %cst_66 = arith.constant 5.000000e-01 : f32
    %180 = vector.broadcast %cst_66 : f32 to vector<2x128xf32>
    %181 = arith.addf %179, %180 : vector<2x128xf32>
    %182 = arith.mulf %171, %148 : vector<2x128xf32>
    %183 = arith.mulf %163, %173 : vector<2x128xf32>
    %184 = arith.addf %182, %183 : vector<2x128xf32>
    %185 = math.tanh %184 : vector<2x128xf32>
    %186 = arith.mulf %181, %185 : vector<2x128xf32>
    %187 = vector.extract_strided_slice %186 {offsets = [0, 0], sizes = [2, 64], strides = [1, 1]} : vector<2x128xf32> to vector<2x64xf32>
    %188 = vector.extract_strided_slice %5 {offsets = [10, 0], sizes = [2, 512], strides = [1, 1]} : vector<16x512xf32> to vector<2x512xf32>
    %c0_67 = arith.constant 0 : index
    %c0_68 = arith.constant 0 : index
    %189 = vector.load %arg3[%c0_67, %c0_68] : memref<64x512xf32, #tpu.memory_space<vmem>>, vector<64x512xf32>
    %cst_69 = arith.constant dense<0.000000e+00> : vector<2x512xf32>
    %190 = tpu.matmul %187, %189, %cst_69 {dimension_numbers = #tpu.dot_dimension_numbers<[1], [0], [0], [1], [0, 0, 1, 1], [], []>} : vector<2x64xf32>, vector<64x512xf32>, vector<2x512xf32> -> vector<2x512xf32>
    %191 = arith.addf %188, %190 : vector<2x512xf32>
    %192 = vector.extract_strided_slice %191 {offsets = [0, 0], sizes = [2, 128], strides = [1, 1]} : vector<2x512xf32> to vector<2x128xf32>
    %cst_70 = arith.constant 5.000000e-01 : f32
    %193 = vector.broadcast %cst_70 : f32 to vector<2x128xf32>
    %194 = arith.mulf %193, %192 : vector<2x128xf32>
    %195 = math.tanh %194 : vector<2x128xf32>
    %cst_71 = arith.constant 5.000000e-01 : f32
    %196 = vector.broadcast %cst_71 : f32 to vector<2x128xf32>
    %197 = arith.mulf %196, %195 : vector<2x128xf32>
    %cst_72 = arith.constant 5.000000e-01 : f32
    %198 = vector.broadcast %cst_72 : f32 to vector<2x128xf32>
    %199 = arith.addf %197, %198 : vector<2x128xf32>
    %200 = vector.extract_strided_slice %191 {offsets = [0, 128], sizes = [2, 128], strides = [1, 1]} : vector<2x512xf32> to vector<2x128xf32>
    %cst_73 = arith.constant 5.000000e-01 : f32
    %201 = vector.broadcast %cst_73 : f32 to vector<2x128xf32>
    %202 = arith.mulf %201, %200 : vector<2x128xf32>
    %203 = math.tanh %202 : vector<2x128xf32>
    %cst_74 = arith.constant 5.000000e-01 : f32
    %204 = vector.broadcast %cst_74 : f32 to vector<2x128xf32>
    %205 = arith.mulf %204, %203 : vector<2x128xf32>
    %cst_75 = arith.constant 5.000000e-01 : f32
    %206 = vector.broadcast %cst_75 : f32 to vector<2x128xf32>
    %207 = arith.addf %205, %206 : vector<2x128xf32>
    %208 = vector.extract_strided_slice %191 {offsets = [0, 256], sizes = [2, 128], strides = [1, 1]} : vector<2x512xf32> to vector<2x128xf32>
    %209 = math.tanh %208 : vector<2x128xf32>
    %210 = vector.extract_strided_slice %191 {offsets = [0, 384], sizes = [2, 128], strides = [1, 1]} : vector<2x512xf32> to vector<2x128xf32>
    %cst_76 = arith.constant 5.000000e-01 : f32
    %211 = vector.broadcast %cst_76 : f32 to vector<2x128xf32>
    %212 = arith.mulf %211, %210 : vector<2x128xf32>
    %213 = math.tanh %212 : vector<2x128xf32>
    %cst_77 = arith.constant 5.000000e-01 : f32
    %214 = vector.broadcast %cst_77 : f32 to vector<2x128xf32>
    %215 = arith.mulf %214, %213 : vector<2x128xf32>
    %cst_78 = arith.constant 5.000000e-01 : f32
    %216 = vector.broadcast %cst_78 : f32 to vector<2x128xf32>
    %217 = arith.addf %215, %216 : vector<2x128xf32>
    %218 = arith.mulf %207, %184 : vector<2x128xf32>
    %219 = arith.mulf %199, %209 : vector<2x128xf32>
    %220 = arith.addf %218, %219 : vector<2x128xf32>
    %221 = math.tanh %220 : vector<2x128xf32>
    %222 = arith.mulf %217, %221 : vector<2x128xf32>
    %223 = vector.extract_strided_slice %222 {offsets = [0, 0], sizes = [2, 64], strides = [1, 1]} : vector<2x128xf32> to vector<2x64xf32>
    %224 = vector.extract_strided_slice %5 {offsets = [12, 0], sizes = [2, 512], strides = [1, 1]} : vector<16x512xf32> to vector<2x512xf32>
    %c0_79 = arith.constant 0 : index
    %c0_80 = arith.constant 0 : index
    %225 = vector.load %arg3[%c0_79, %c0_80] : memref<64x512xf32, #tpu.memory_space<vmem>>, vector<64x512xf32>
    %cst_81 = arith.constant dense<0.000000e+00> : vector<2x512xf32>
    %226 = tpu.matmul %223, %225, %cst_81 {dimension_numbers = #tpu.dot_dimension_numbers<[1], [0], [0], [1], [0, 0, 1, 1], [], []>} : vector<2x64xf32>, vector<64x512xf32>, vector<2x512xf32> -> vector<2x512xf32>
    %227 = arith.addf %224, %226 : vector<2x512xf32>
    %228 = vector.extract_strided_slice %227 {offsets = [0, 0], sizes = [2, 128], strides = [1, 1]} : vector<2x512xf32> to vector<2x128xf32>
    %cst_82 = arith.constant 5.000000e-01 : f32
    %229 = vector.broadcast %cst_82 : f32 to vector<2x128xf32>
    %230 = arith.mulf %229, %228 : vector<2x128xf32>
    %231 = math.tanh %230 : vector<2x128xf32>
    %cst_83 = arith.constant 5.000000e-01 : f32
    %232 = vector.broadcast %cst_83 : f32 to vector<2x128xf32>
    %233 = arith.mulf %232, %231 : vector<2x128xf32>
    %cst_84 = arith.constant 5.000000e-01 : f32
    %234 = vector.broadcast %cst_84 : f32 to vector<2x128xf32>
    %235 = arith.addf %233, %234 : vector<2x128xf32>
    %236 = vector.extract_strided_slice %227 {offsets = [0, 128], sizes = [2, 128], strides = [1, 1]} : vector<2x512xf32> to vector<2x128xf32>
    %cst_85 = arith.constant 5.000000e-01 : f32
    %237 = vector.broadcast %cst_85 : f32 to vector<2x128xf32>
    %238 = arith.mulf %237, %236 : vector<2x128xf32>
    %239 = math.tanh %238 : vector<2x128xf32>
    %cst_86 = arith.constant 5.000000e-01 : f32
    %240 = vector.broadcast %cst_86 : f32 to vector<2x128xf32>
    %241 = arith.mulf %240, %239 : vector<2x128xf32>
    %cst_87 = arith.constant 5.000000e-01 : f32
    %242 = vector.broadcast %cst_87 : f32 to vector<2x128xf32>
    %243 = arith.addf %241, %242 : vector<2x128xf32>
    %244 = vector.extract_strided_slice %227 {offsets = [0, 256], sizes = [2, 128], strides = [1, 1]} : vector<2x512xf32> to vector<2x128xf32>
    %245 = math.tanh %244 : vector<2x128xf32>
    %246 = vector.extract_strided_slice %227 {offsets = [0, 384], sizes = [2, 128], strides = [1, 1]} : vector<2x512xf32> to vector<2x128xf32>
    %cst_88 = arith.constant 5.000000e-01 : f32
    %247 = vector.broadcast %cst_88 : f32 to vector<2x128xf32>
    %248 = arith.mulf %247, %246 : vector<2x128xf32>
    %249 = math.tanh %248 : vector<2x128xf32>
    %cst_89 = arith.constant 5.000000e-01 : f32
    %250 = vector.broadcast %cst_89 : f32 to vector<2x128xf32>
    %251 = arith.mulf %250, %249 : vector<2x128xf32>
    %cst_90 = arith.constant 5.000000e-01 : f32
    %252 = vector.broadcast %cst_90 : f32 to vector<2x128xf32>
    %253 = arith.addf %251, %252 : vector<2x128xf32>
    %254 = arith.mulf %243, %220 : vector<2x128xf32>
    %255 = arith.mulf %235, %245 : vector<2x128xf32>
    %256 = arith.addf %254, %255 : vector<2x128xf32>
    %257 = math.tanh %256 : vector<2x128xf32>
    %258 = arith.mulf %253, %257 : vector<2x128xf32>
    %259 = vector.extract_strided_slice %258 {offsets = [0, 0], sizes = [2, 64], strides = [1, 1]} : vector<2x128xf32> to vector<2x64xf32>
    %260 = vector.extract_strided_slice %5 {offsets = [14, 0], sizes = [2, 512], strides = [1, 1]} : vector<16x512xf32> to vector<2x512xf32>
    %c0_91 = arith.constant 0 : index
    %c0_92 = arith.constant 0 : index
    %261 = vector.load %arg3[%c0_91, %c0_92] : memref<64x512xf32, #tpu.memory_space<vmem>>, vector<64x512xf32>
    %cst_93 = arith.constant dense<0.000000e+00> : vector<2x512xf32>
    %262 = tpu.matmul %259, %261, %cst_93 {dimension_numbers = #tpu.dot_dimension_numbers<[1], [0], [0], [1], [0, 0, 1, 1], [], []>} : vector<2x64xf32>, vector<64x512xf32>, vector<2x512xf32> -> vector<2x512xf32>
    %263 = arith.addf %260, %262 : vector<2x512xf32>
    %264 = vector.extract_strided_slice %263 {offsets = [0, 0], sizes = [2, 128], strides = [1, 1]} : vector<2x512xf32> to vector<2x128xf32>
    %cst_94 = arith.constant 5.000000e-01 : f32
    %265 = vector.broadcast %cst_94 : f32 to vector<2x128xf32>
    %266 = arith.mulf %265, %264 : vector<2x128xf32>
    %267 = math.tanh %266 : vector<2x128xf32>
    %cst_95 = arith.constant 5.000000e-01 : f32
    %268 = vector.broadcast %cst_95 : f32 to vector<2x128xf32>
    %269 = arith.mulf %268, %267 : vector<2x128xf32>
    %cst_96 = arith.constant 5.000000e-01 : f32
    %270 = vector.broadcast %cst_96 : f32 to vector<2x128xf32>
    %271 = arith.addf %269, %270 : vector<2x128xf32>
    %272 = vector.extract_strided_slice %263 {offsets = [0, 128], sizes = [2, 128], strides = [1, 1]} : vector<2x512xf32> to vector<2x128xf32>
    %cst_97 = arith.constant 5.000000e-01 : f32
    %273 = vector.broadcast %cst_97 : f32 to vector<2x128xf32>
    %274 = arith.mulf %273, %272 : vector<2x128xf32>
    %275 = math.tanh %274 : vector<2x128xf32>
    %cst_98 = arith.constant 5.000000e-01 : f32
    %276 = vector.broadcast %cst_98 : f32 to vector<2x128xf32>
    %277 = arith.mulf %276, %275 : vector<2x128xf32>
    %cst_99 = arith.constant 5.000000e-01 : f32
    %278 = vector.broadcast %cst_99 : f32 to vector<2x128xf32>
    %279 = arith.addf %277, %278 : vector<2x128xf32>
    %280 = vector.extract_strided_slice %263 {offsets = [0, 256], sizes = [2, 128], strides = [1, 1]} : vector<2x512xf32> to vector<2x128xf32>
    %281 = math.tanh %280 : vector<2x128xf32>
    %282 = vector.extract_strided_slice %263 {offsets = [0, 384], sizes = [2, 128], strides = [1, 1]} : vector<2x512xf32> to vector<2x128xf32>
    %cst_100 = arith.constant 5.000000e-01 : f32
    %283 = vector.broadcast %cst_100 : f32 to vector<2x128xf32>
    %284 = arith.mulf %283, %282 : vector<2x128xf32>
    %285 = math.tanh %284 : vector<2x128xf32>
    %cst_101 = arith.constant 5.000000e-01 : f32
    %286 = vector.broadcast %cst_101 : f32 to vector<2x128xf32>
    %287 = arith.mulf %286, %285 : vector<2x128xf32>
    %cst_102 = arith.constant 5.000000e-01 : f32
    %288 = vector.broadcast %cst_102 : f32 to vector<2x128xf32>
    %289 = arith.addf %287, %288 : vector<2x128xf32>
    %290 = arith.mulf %279, %256 : vector<2x128xf32>
    %291 = arith.mulf %271, %281 : vector<2x128xf32>
    %292 = arith.addf %290, %291 : vector<2x128xf32>
    %293 = math.tanh %292 : vector<2x128xf32>
    %294 = arith.mulf %289, %293 : vector<2x128xf32>
    %295 = vector.extract_strided_slice %294 {offsets = [0, 0], sizes = [2, 64], strides = [1, 1]} : vector<2x128xf32> to vector<2x64xf32>
    %c0_103 = arith.constant 0 : index
    %c0_104 = arith.constant 0 : index
    %296 = vector.load %arg4[%c0_103, %c0_104] : memref<64x128xf32, #tpu.memory_space<vmem>>, vector<64x128xf32>
    %cst_105 = arith.constant dense<0.000000e+00> : vector<2x128xf32>
    %297 = tpu.matmul %295, %296, %cst_105 {dimension_numbers = #tpu.dot_dimension_numbers<[1], [0], [0], [1], [0, 0, 1, 1], [], []>} : vector<2x64xf32>, vector<64x128xf32>, vector<2x128xf32> -> vector<2x128xf32>
    %298 = vector.extract_strided_slice %297 {offsets = [0, 0], sizes = [2, 4], strides = [1, 1]} : vector<2x128xf32> to vector<2x4xf32>
    %c0_106 = arith.constant 0 : index
    %c0_107 = arith.constant 0 : index
    %299 = vector.load %arg5[%c0_106, %c0_107] : memref<1x4xf32, #tpu.memory_space<vmem>>, vector<1x4xf32>
    %300 = vector.broadcast %299 : vector<1x4xf32> to vector<2x4xf32>
    %301 = arith.addf %298, %300 : vector<2x4xf32>
    %c0_108 = arith.constant 0 : index
    %c0_109 = arith.constant 0 : index
    %c0_110 = arith.constant 0 : index
    %302 = vector.load %arg6[%c0_108, %c0_109, %c0_110] : memref<1x2x4xf32, #tpu.memory_space<vmem>>, vector<1x2x4xf32>
    %303 = vector.shape_cast %302 : vector<1x2x4xf32> to vector<2x4xf32>
    %304 = vector.shape_cast %301 : vector<2x4xf32> to vector<1x2x4xf32>
    tpu.vector_store %arg6[%c0_108, %c0_109, %c0_110], %304 {strides = array<i32>} : memref<1x2x4xf32, #tpu.memory_space<vmem>>, vector<1x2x4xf32>,
    return
  }
}

</mosaic_0001>

<bundles_post_ra>
// kernel: neural_network_forward.1
= control target key start
LH: loop header
LB: loop body
LE: loop exit
PB: predicated region body
PF: predicated region fallthrough
CT: control target
= control target key end

     0   :  { %11 = vsyncpa [#allocation3], 0  ;;  %s2662_s0 = inlined_call_operand.vmem [shape: f32[16,8], index: 0, kind: input, shape index: {}]   ;;  %s2663_s1 = inlined_call_operand.hbm [shape: f32[8,512], index: 1, kind: input, shape index: {}]   ;;  %s2664_s2 = inlined_call_operand.vmem [shape: f32[1,512], index: 2, kind: input, shape index: {}]   ;;  %s2665_s3 = inlined_call_operand.hbm [shape: f32[64,512], index: 3, kind: input, shape index: {}]   ;;  %s2666_s4 = inlined_call_operand.vmem [shape: f32[64,128], index: 4, kind: input, shape index: {}]   ;;  %s2667_s5 = inlined_call_operand.vmem [shape: f32[1,4], index: 5, kind: input, shape index: {}]   ;;  %s2668_s6 = inlined_call_operand.hbm [shape: f32[1,2,4], index: 6, kind: output, shape index: {}]  }
   0x1   :  { %12 = vsyncpa [#allocation6], 0 }
   0x2   :  { %13 = vsyncpa [#allocation4], 0  ;;  %s2290_s21 = smov [#allocation2]   ;;  %s2291_s23 = smov [#allocation5]  }
   0x3   :  { %s22_s22 = sshll.u32 %s2290_s21, 4  ;;  %s33_s24 = sshll.u32 %s2291_s23, 4  ;;  %s23_s22 = int_to_ptr.vmem [resolvable:$true] %s22_s22  ;;  %s2333_s24 = int_to_ptr.vmem [resolvable:$true] %s33_s24 }
   0x4   :  { %s2218_s27 = scalar_lea.hbm %s2663_s1, 512 }
   0x5   :  { %p2219_p0 = scmp.ne.s32.totalorder %s2663_s1, %s2218_s27  ;;  %p2222_p1 = scmp.lt.u32.totalorder %s2218_s27, %s2663_s1 }
   0x7   :  { %p2224_p2 = pnand %p2222_p1, %p2219_p0 }
   0x9   :  { %2227 = shalt.err (!%p2224_p2)
}
   0xa   :  { %s2228_s8 = scalar_lea.vmem %s23_s22, 512  ;;  %p2233_p4 = scmp.lt.s32.totalorder %s23_s22, %s23_s22 }
   0xb   :  { %p2229_p3 = scmp.ne.s32.totalorder %s23_s22, %s2228_s8  ;;  %p2234_p5 = scmp.lt.s32.totalorder %s2228_s8, %s2228_s8 }
   0xd   :  { %p2235_p6 = por %p2234_p5, %p2233_p4 }
   0xf   :  { %p2236_p7 = pnand %p2235_p6, %p2229_p3 }
  0x11   :  { %2239 = shalt.err (!%p2236_p7)
}
  0x12   :  { %25 = dma.hbm_to_vmem [thread:$0]  %s2663_s1, 512, %s23_s22, [#allocation3]  }
  0x13   :  { %s2240_s13 = scalar_lea.hbm %s2665_s3, 4096 }
  0x14   :  { %p2241_p8 = scmp.ne.s32.totalorder %s2665_s3, %s2240_s13  ;;  %p2244_p9 = scmp.lt.u32.totalorder %s2240_s13, %s2665_s3 }
  0x16   :  { %p2246_p10 = pnand %p2244_p9, %p2241_p8 }
  0x18   :  { %2249 = shalt.err (!%p2246_p10)
}
  0x19   :  { %s2250_s18 = scalar_lea.vmem %s2333_s24, 4096  ;;  %p2255_p12 = scmp.lt.s32.totalorder %s2333_s24, %s2333_s24 }
  0x1a   :  { %p2251_p11 = scmp.ne.s32.totalorder %s2333_s24, %s2250_s18  ;;  %p2256_p13 = scmp.lt.s32.totalorder %s2250_s18, %s2250_s18 }
  0x1c   :  { %p2257_p0 = por %p2256_p13, %p2255_p12 }
  0x1e   :  { %p2258_p1 = pnand %p2257_p0, %p2251_p11 }
  0x20   :  { %2261 = shalt.err (!%p2258_p1)
}
  0x21   :  { %s2292_s1 = smov 512   ;;  %s2293_s19 = smov 32  }
  0x22   :  { %39 = dma.hbm_to_vmem [thread:$0]  %s2665_s3, 4096, %s2333_s24, [#allocation6], %s2292_s1, %s2292_s1, %s2293_s19  }
  0x23   :  { %2284 = dma.done.wait [#allocation3], 512  }
  0x24   :  { %2285 = vsyncadd [#allocation3], 4294966784 }
  0x25   :  { %2286 = dma.done.wait [#allocation6], 4096  }
  0x26   :  { %2287 = vsyncadd [#allocation6], 4294963200  ;;  %v2294_v0 = vmov 0.0   ;;  %v53_v1 = vld [vmem:[#allocation2 + $0x8] sm:$0xff]  ;;  %v52_v2 = vld [vmem:[#allocation2] sm:$0xff]  ;;  %vm78_vm0 = vcmask 64512   ;;  %v58_v55 = vlaneseq }
  0x27   :  { %149 = vmatprep.mubr.f32.mxu1 %v2294_v0  ;;  %339 = vmatprep.mubr.f32.mxu0 %v2294_v0  ;;  %v50_v3 = vld [vmem:[%s2662_s0] sm:$0xff]  ;;  %v55_v4 = vld [vmem:[#allocation2 + $0x18] sm:$0xff]  ;;  %v240_v5 = vld [vmem:[#allocation5 + $0x8] sm:$0xff]  ;;  %vm271_vm1 = vcmask 523264   ;;  %vm2296_vm2 = vmmov 0   ;;  %s2297_s18 = smov [#allocation7]  }
  0x28   :  { %85 = vmatprep.subr.mxu1 %v53_v1  ;;  %v244_v6 = vld [vmem:[#allocation5 + $0x28] sm:$0xff]  ;;  %v54_v8 = vld [vmem:[#allocation2 + $0x10] sm:$0xff]  ;;  %v239_v9 = vld [vmem:[#allocation5] sm:$0xff]  ;;  %v59_v56 = vshrl.u32 %v58_v55, 7  ;;  %s1804_s1 = sshll.u32 %s2297_s18, 4  ;;  %vm1796_vm3 = vcmask 25600   ;;  %s1805_s1 = int_to_ptr.vmem [resolvable:$true] %s1804_s1 }
  0x29   :  { %86 = vmatpush1.msra.mxu1 %v52_v2  ;;  %v2369_v7 = vpack.c.bf16 %v244_v6, %v240_v5  ;;  %v243_v10 = vld [vmem:[#allocation5 + $0x20] sm:$0xff]  ;;  %v51_v12 = vld [vmem:[%s2662_s0 + $0x8] sm:$0xff]  ;;  %v242_v18 = vld [vmem:[#allocation5 + $0x18] sm:$0xff]  ;;  %s2262_s19 = scalar_lea.vmem %s1805_s1, 32  ;;  %p2267_p3 = scmp.lt.s32.totalorder %s1805_s1, %s1805_s1 }
  0x2a   :  { %1814 = vmatmul.mubr.msk.f32.vlgmr.msra.gmra.mrb[0].mxu1 %vm78_vm0, %v50_v3  ;;  %162 = vmatprep.subr.mxu1 %v55_v4  ;;  %v2372_v11 = vpack.c.bf16 %v243_v10, %v239_v9  ;;  %v248_v13 = vld [vmem:[#allocation5 + $0x48] sm:$0xff]  ;;  %v247_v16 = vld [vmem:[#allocation5 + $0x40] sm:$0xff]  ;;  %v246_v20 = vld [vmem:[#allocation5 + $0x38] sm:$0xff]  ;;  %v60_v57 = vsub.s32 0, %v59_v56  ;;  %v64_v60 = vsub.s32 1, %v59_v56  ;;  %v68_v5 = vsub.s32 2, %v59_v56  ;;  %p2263_p2 = scmp.ne.s32.totalorder %s1805_s1, %s2262_s19  ;;  %p2268_p4 = scmp.lt.s32.totalorder %s2262_s19, %s2262_s19 }
  0x2b   :  { %v252_v14 = vld [vmem:[#allocation5 + $0x68] sm:$0xff]  ;;  %1863 = vmatprep.subr.bf16.mxu0 %v2369_v7  ;;  %163 = vmatpush1.msra.mxu1 %v54_v8  ;;  %v251_v17 = vld [vmem:[#allocation5 + $0x60] sm:$0xff]  ;;  %v2385_v23 = vpack.c.bf16 %v246_v20, %v242_v18  ;;  %v241_v25 = vld [vmem:[#allocation5 + $0x10] sm:$0xff]  ;;  %v72_v8 = vsub.s32 3, %v59_v56 }
  0x2c   :  { %v2378_v15 = vpack.c.bf16 %v252_v14, %v248_v13  ;;  %1865 = vmatpush1.bf16.msra.mxu0 %v2372_v11  ;;  %155 = vmatprep.mubr.f32.mxu1 %v2294_v0  ;;  %v2382_v19 = vpack.c.bf16 %v251_v17, %v247_v16  ;;  %v256_v21 = vld [vmem:[#allocation5 + $0x88] sm:$0xff]  ;;  %v245_v26 = vld [vmem:[#allocation5 + $0x30] sm:$0xff]  ;;  %v255_v27 = vld [vmem:[#allocation5 + $0x80] sm:$0xff]  ;;  %p2269_p5 = por %p2268_p4, %p2267_p3 }
  0x2d   :  { %v260_v22 = vld [vmem:[#allocation5 + $0xa8] sm:$0xff]  ;;  %v259_v28 = vld [vmem:[#allocation5 + $0xa0] sm:$0xff]  ;;  %v250_v29 = vld [vmem:[#allocation5 + $0x58] sm:$0xff]  ;;  %1879 = vmatprep.subr.bf16.mxu1 %v2385_v23  ;;  %v2392_v31 = vpack.c.bf16 %v245_v26, %v241_v25 }
  0x2e   :  { %1867 = vmatprep.subr.bf16.mxu0 %v2378_v15  ;;  %v2387_v24 = vpack.c.bf16 %v260_v22, %v256_v21  ;;  %1815 = vmatmul.mubr.msk.f32.gmra.mrb[2].mxu1 %vm78_vm0, %v51_v12  ;;  %v254_v30 = vld [vmem:[#allocation5 + $0x78] sm:$0xff]  ;;  %v264_v32 = vld [vmem:[#allocation5 + $0xc8] sm:$0xff]  ;;  %v2395_v34 = vpack.c.bf16 %v259_v28, %v255_v27  ;;  %v249_v36 = vld [vmem:[#allocation5 + $0x50] sm:$0xff]  ;;  %p2270_p6 = pnand %p2269_p5, %p2263_p2 }
  0x2f   :  { %226 = vmatprep.mubr.f32.mxu1 %v2294_v0  ;;  %v268_v33 = vld [vmem:[#allocation5 + $0xe8] sm:$0xff]  ;;  %v2397_v35 = vpack.c.bf16 %v254_v30, %v250_v29  ;;  %v253_v37 = vld [vmem:[#allocation5 + $0x70] sm:$0xff]  ;;  %v263_v38 = vld [vmem:[#allocation5 + $0xc0] sm:$0xff] }
  0x30   :  { %1869 = vmatpush1.bf16.msra.mxu0 %v2382_v19  ;;  %v2400_v39 = vpack.c.bf16 %v268_v33, %v264_v32  ;;  %v267_v40 = vld [vmem:[#allocation5 + $0xe0] sm:$0xff]  ;;  %v258_v41 = vld [vmem:[#allocation5 + $0x98] sm:$0xff]  ;;  %v2404_v43 = vpack.c.bf16 %v253_v37, %v249_v36  ;;  %v257_v46 = vld [vmem:[#allocation5 + $0x90] sm:$0xff] }
  0x31   :  { %1871 = vmatprep.subr.bf16.mxu0 %v2387_v24  ;;  %v262_v42 = vld [vmem:[#allocation5 + $0xb8] sm:$0xff]  ;;  %v2409_v44 = vpack.c.bf16 %v267_v40, %v263_v38  ;;  %v261_v47 = vld [vmem:[#allocation5 + $0xb0] sm:$0xff]  ;;  %v56_v58 = vld [vmem:[%s2664_s2] sm:$0xf] }
  0x32   :  { %1816 = vmatmul.mubr.msk.f32.vlgmr.msra.gmra.mrb[4].mxu1 %vm78_vm0, %v50_v3  ;;  %v2411_v45 = vpack.c.bf16 %v262_v42, %v258_v41  ;;  %v266_v48 = vld [vmem:[#allocation5 + $0xd8] sm:$0xff]  ;;  %v2416_v50 = vpack.c.bf16 %v261_v47, %v257_v46  ;;  %v265_v52 = vld [vmem:[#allocation5 + $0xd0] sm:$0xff]  ;;  %v61_v62 = vrot.slane %v56_v58, %v60_v57  ;;  %v65_v63 = vrot.slane %v56_v58, %v64_v60 }
  0x33   :  { %1881 = vmatpush1.bf16.msra.mxu1 %v2392_v31  ;;  %232 = vmatprep.mubr.f32.mxu1 %v2294_v0  ;;  %v270_v49 = vld [vmem:[#allocation5 + $0xf8] sm:$0xff]  ;;  %v269_v53 = vld [vmem:[#allocation5 + $0xf0] sm:$0xff]  ;;  %v69_v10 = vrot.slane %v56_v58, %v68_v5 }
  0x34   :  { %1873 = vmatpush1.bf16.msra.mxu0 %v2395_v34  ;;  %1883 = vmatprep.subr.bf16.mxu1 %v2397_v35  ;;  %v2421_v51 = vpack.c.bf16 %v270_v49, %v266_v48  ;;  %v2426_v54 = vpack.c.bf16 %v269_v53, %v265_v52 }
  0x35   :  { %1875 = vmatprep.subr.bf16.mxu0 %v2400_v39 }
  0x36   :  { %1817 = vmatmul.mubr.msk.f32.gmra.mrb[6].mxu1 %vm78_vm0, %v51_v12  ;;  %v73_v12 = vrot.slane %v56_v58, %v72_v8 }
  0x37   :  { %1885 = vmatpush1.bf16.msra.mxu1 %v2404_v43  ;;  %410 = vmatprep.mubr.f32.mxu1 %v2294_v0 }
  0x38   :  { %1877 = vmatpush1.bf16.msra.mxu0 %v2409_v44  ;;  %1887 = vmatprep.subr.bf16.mxu1 %v2411_v45 }
  0x39   :  { %1895 = vmatprep.subr.bf16.mxu0 %v2369_v7 }
  0x3b   :  { %340 = vmatmul.mubr.f32.vlgmr.msra.gmra.mrb[0].mxu0 %v2294_v0  ;;  %1889 = vmatpush1.bf16.msra.mxu1 %v2416_v50 }
  0x3c   :  { %1891 = vmatprep.subr.bf16.mxu1 %v2421_v51  ;;  %1897 = vmatpush1.bf16.msra.mxu0 %v2372_v11 }
  0x3d   :  { %1899 = vmatprep.subr.bf16.mxu0 %v2378_v15  ;;  %506 = vmatprep.mubr.f32.mxu0 %v2294_v0 }
  0x3f   :  { %1893 = vmatpush1.bf16.msra.mxu1 %v2426_v54 }
  0x40   :  { %1911 = vmatprep.subr.bf16.mxu1 %v2385_v23  ;;  %1901 = vmatpush1.bf16.msra.mxu0 %v2382_v19 }
  0x41   :  { %1903 = vmatprep.subr.bf16.mxu0 %v2387_v24 }
  0x42   :  { %411 = vmatmul.mubr.f32.vlgmr.msra.gmra.mrb[8].mxu1 %v2294_v0 }
  0x43   :  { %1913 = vmatpush1.bf16.msra.mxu1 %v2392_v31  ;;  %577 = vmatprep.mubr.f32.mxu1 %v2294_v0 }
  0x44   :  { %1915 = vmatprep.subr.bf16.mxu1 %v2397_v35  ;;  %1905 = vmatpush1.bf16.msra.mxu0 %v2395_v34 }
  0x45   :  { %1907 = vmatprep.subr.bf16.mxu0 %v2400_v39 }
  0x47   :  { %1917 = vmatpush1.bf16.msra.mxu1 %v2404_v43 }
  0x48   :  { %1919 = vmatprep.subr.bf16.mxu1 %v2411_v45  ;;  %1909 = vmatpush1.bf16.msra.mxu0 %v2409_v44 }
  0x49   :  { %1927 = vmatprep.subr.bf16.mxu0 %v2369_v7 }
  0x4b   :  { %1921 = vmatpush1.bf16.msra.mxu1 %v2416_v50 }
  0x4c   :  { %1923 = vmatprep.subr.bf16.mxu1 %v2421_v51 }
  0x4f   :  { %1925 = vmatpush1.bf16.msra.mxu1 %v2426_v54 }
  0x50   :  { %1943 = vmatprep.subr.bf16.mxu1 %v2385_v23 }
  0xfd   :  { %v151_v59 = vpop.f32.mrb[0].mxu1 }
  0xfe   :  { %v153_v61 = vpop.f32.mrb[1].mxu1  ;;  %v2461_v18 = vadd.f32 %v151_v59, %v61_v62 }
  0xff   :  { %v2463_v20 = vadd.f32 %v153_v61, %v65_v63 }
 0x101   :  { %v157_v1 = vpop.f32.mrb[2].mxu1 }
 0x102   :  { %v2453_v2 = vadd.f32 %v157_v1, %v61_v62  ;;  %v159_v3 = vpop.f32.mrb[3].mxu1 }
 0x103   :  { %v2455_v4 = vadd.f32 %v159_v3, %v65_v63 }
 0x105   :  { %v228_v6 = vpop.f32.mrb[4].mxu1 }
 0x106   :  { %v230_v9 = vpop.f32.mrb[5].mxu1  ;;  %v2467_v29 = vadd.f32 %v228_v6, %v69_v10 }
 0x107   :  { %v2469_v30 = vadd.f32 %v230_v9, %v73_v12 }
 0x109   :  { %v234_v13 = vpop.f32.mrb[6].mxu1 }
 0x10a   :  { %v2457_v14 = vadd.f32 %v234_v13, %v69_v10  ;;  %v236_v16 = vpop.f32.mrb[7].mxu1 }
 0x10b   :  { %v2459_v17 = vadd.f32 %v236_v16, %v73_v12 }
 0x10e   :  { %v341_v21 = vpop.f32.mrb[0].mxu0 }
 0x10f   :  { %v417_v22 = vadd.f32 %v341_v21, %v2461_v18  ;;  %v343_v25 = vpop.f32.mrb[1].mxu0 }
 0x110   :  { %v418_v26 = vadd.f32 %v343_v25, %v2463_v20 }
 0x111   :  { %v421_v27 = vmul.f32 0.5, %v417_v22 }
 0x112   :  { %v425_v28 = vmul.f32 0.5, %v418_v26 }
 0x113   :  { %2138 = vtanh.f32 %v421_v27 }
 0x114   :  { %2140 = vtanh.f32 %v425_v28 }
 0x115   :  { %v412_v32 = vpop.f32.mrb[8].mxu1 }
 0x116   :  { %v419_v33 = vadd.f32 %v412_v32, %v2467_v29  ;;  %v414_v36 = vpop.f32.mrb[9].mxu1 }
 0x117   :  { %v420_v37 = vadd.f32 %v414_v36, %v2469_v30 }
 0x118   :  { %2142 = vtanh.f32 %v419_v33 }
 0x119   :  { %v430_v38 = vmul.f32 0.5, %v420_v37 }
 0x11b   :  { %2144 = vtanh.f32 %v430_v38 }
 0x11d   :  { %v2139_v40 = vpop.eup %2138 }
 0x11e   :  { %v2141_v41 = vpop.eup %2140  ;;  %v423_v42 = vmul.f32 0.5, %v2139_v40 }
 0x11f   :  { %v427_v46 = vmul.f32 0.5, %v2141_v41 }
 0x120   :  { %v424_v47 = vadd.f32 0.5, %v423_v42 }
 0x121   :  { %v428_v48 = vadd.f32 0.5, %v427_v46 }
 0x122   :  { %v2143_v49 = vpop.eup %2142 }
 0x123   :  { %v434_v52 = vmul.f32 0.0, %v428_v48  ;;  %v435_v53 = vmul.f32 %v2143_v49, %v424_v47 }
 0x125   :  { %v436_v55 = vadd.f32 %v435_v53, %v434_v52  ;;  %v2145_v56 = vpop.eup %2144 }
 0x126   :  { %v432_v57 = vmul.f32 0.5, %v2145_v56 }
 0x127   :  { %2146 = vtanh.f32 %v436_v55  ;;  %v614_v37 = vrot.slane %v436_v55, 6 }
 0x128   :  { %v433_v58 = vadd.f32 0.5, %v432_v57 }
 0x131   :  { %v2147_v59 = vpop.eup %2146 }
 0x132   :  { %v438_v60 = vmul.f32 %v2147_v59, %v433_v58 }
 0x134   :  { %1818 = vmatmul.mubr.msk.f32.vlgmr.msra.gmra.mrb[2].mxu0 %vm271_vm1, %v438_v60  ;;  %1819 = vmatmul.mubr.msk.f32.vlgmr.msra.gmra.mrb[10].mxu1 %vm271_vm1, %v438_v60 }
 0x135   :  { %1929 = vmatpush1.bf16.msra.mxu0 %v2372_v11  ;;  %1945 = vmatpush1.bf16.msra.mxu1 %v2392_v31 }
 0x136   :  { %1931 = vmatprep.subr.bf16.mxu0 %v2378_v15  ;;  %1947 = vmatprep.subr.bf16.mxu1 %v2397_v35 }
 0x137   :  { %689 = vmatprep.mubr.f32.mxu0 %v2294_v0  ;;  %760 = vmatprep.mubr.f32.mxu1 %v2294_v0 }
 0x139   :  { %1933 = vmatpush1.bf16.msra.mxu0 %v2382_v19  ;;  %1949 = vmatpush1.bf16.msra.mxu1 %v2404_v43 }
 0x13a   :  { %1935 = vmatprep.subr.bf16.mxu0 %v2387_v24  ;;  %1951 = vmatprep.subr.bf16.mxu1 %v2411_v45 }
 0x13d   :  { %1937 = vmatpush1.bf16.msra.mxu0 %v2395_v34  ;;  %1953 = vmatpush1.bf16.msra.mxu1 %v2416_v50 }
 0x13e   :  { %1939 = vmatprep.subr.bf16.mxu0 %v2400_v39  ;;  %1955 = vmatprep.subr.bf16.mxu1 %v2421_v51 }
 0x141   :  { %1941 = vmatpush1.bf16.msra.mxu0 %v2409_v44  ;;  %1957 = vmatpush1.bf16.msra.mxu1 %v2426_v54 }
 0x142   :  { %1959 = vmatprep.subr.bf16.mxu0 %v2369_v7  ;;  %1975 = vmatprep.subr.bf16.mxu1 %v2385_v23 }
 0x207   :  { %v508_v61 = vpop.f32.mrb[2].mxu0  ;;  %v579_v62 = vpop.f32.mrb[10].mxu1 }
 0x208   :  { %v588_v63 = vrot.slane %v508_v61, 6  ;;  %v510_v1 = vpop.f32.mrb[3].mxu0  ;;  %v581_v3 = vpop.f32.mrb[11].mxu1  ;;  %v590_v8 = vrot.slane %v579_v62, 6 }
 0x209   :  { %v589_v5 = vrot.slane %v510_v1, 6  ;;  %v591_v16 = vrot.slane %v581_v3, 6 }
 0x20a   :  { %v596_v6 = vadd.f32 %v588_v63, %v2461_v18  ;;  %v598_v13 = vadd.f32 %v590_v8, %v2467_v29 }
 0x20b   :  { %v597_v9 = vadd.f32 %v589_v5, %v2463_v20  ;;  %v599_v21 = vadd.f32 %v591_v16, %v2469_v30 }
 0x20c   :  { %v600_v10 = vmul.f32 0.5, %v596_v6 }
 0x20d   :  { %v604_v12 = vmul.f32 0.5, %v597_v9  ;;  %v609_v22 = vmul.f32 0.5, %v599_v21 }
 0x20e   :  { %2148 = vtanh.f32 %v600_v10 }
 0x20f   :  { %2150 = vtanh.f32 %v604_v12 }
 0x210   :  { %2152 = vtanh.f32 %v598_v13 }
 0x211   :  { %2154 = vtanh.f32 %v609_v22 }
 0x218   :  { %v2149_v25 = vpop.eup %2148 }
 0x219   :  { %v2151_v26 = vpop.eup %2150  ;;  %v602_v27 = vmul.f32 0.5, %v2149_v25 }
 0x21a   :  { %v606_v28 = vmul.f32 0.5, %v2151_v26  ;;  %v2153_v33 = vpop.eup %2152 }
 0x21b   :  { %v603_v32 = vadd.f32 0.5, %v602_v27  ;;  %v2155_v42 = vpop.eup %2154 }
 0x21c   :  { %v607_v36 = vadd.f32 0.5, %v606_v28  ;;  %v611_v46 = vmul.f32 0.5, %v2155_v42 }
 0x21d   :  { %v617_v38 = vmul.f32 %v2153_v33, %v603_v32 }
 0x21e   :  { %v616_v40 = vmul.f32 %v614_v37, %v607_v36  ;;  %v612_v47 = vadd.f32 0.5, %v611_v46 }
 0x220   :  { %v618_v41 = vadd.f32 %v617_v38, %v616_v40 }
 0x222   :  { %2156 = vtanh.f32 %v618_v41  ;;  %v797_v25 = vrot.slane %v618_v41, 6 }
 0x22c   :  { %v2157_v48 = vpop.eup %2156 }
 0x22d   :  { %v620_v49 = vmul.f32 %v2157_v48, %v612_v47 }
 0x22f   :  { %v622_v52 = vrot.slane %v620_v49, 2 }
 0x231   :  { %1820 = vmatmul.mubr.msk.f32.vlgmr.msra.gmra.mrb[4].mxu0 %vm271_vm1, %v622_v52  ;;  %1821 = vmatmul.mubr.msk.f32.vlgmr.msra.gmra.mrb[12].mxu1 %vm271_vm1, %v622_v52 }
 0x232   :  { %1961 = vmatpush1.bf16.msra.mxu0 %v2372_v11  ;;  %1977 = vmatpush1.bf16.msra.mxu1 %v2392_v31 }
 0x233   :  { %1963 = vmatprep.subr.bf16.mxu0 %v2378_v15  ;;  %1979 = vmatprep.subr.bf16.mxu1 %v2397_v35 }
 0x234   :  { %872 = vmatprep.mubr.f32.mxu0 %v2294_v0  ;;  %943 = vmatprep.mubr.f32.mxu1 %v2294_v0 }
 0x236   :  { %1965 = vmatpush1.bf16.msra.mxu0 %v2382_v19  ;;  %1981 = vmatpush1.bf16.msra.mxu1 %v2404_v43 }
 0x237   :  { %1967 = vmatprep.subr.bf16.mxu0 %v2387_v24  ;;  %1983 = vmatprep.subr.bf16.mxu1 %v2411_v45 }
 0x23a   :  { %1969 = vmatpush1.bf16.msra.mxu0 %v2395_v34  ;;  %1985 = vmatpush1.bf16.msra.mxu1 %v2416_v50 }
 0x23b   :  { %1971 = vmatprep.subr.bf16.mxu0 %v2400_v39  ;;  %1987 = vmatprep.subr.bf16.mxu1 %v2421_v51 }
 0x23e   :  { %1973 = vmatpush1.bf16.msra.mxu0 %v2409_v44  ;;  %1989 = vmatpush1.bf16.msra.mxu1 %v2426_v54 }
 0x23f   :  { %1991 = vmatprep.subr.bf16.mxu0 %v2369_v7  ;;  %2007 = vmatprep.subr.bf16.mxu1 %v2385_v23 }
 0x304   :  { %v691_v53 = vpop.f32.mrb[4].mxu0  ;;  %v762_v55 = vpop.f32.mrb[12].mxu1 }
 0x305   :  { %v771_v56 = vrot.slane %v691_v53, 4  ;;  %v693_v57 = vpop.f32.mrb[5].mxu0  ;;  %v764_v58 = vpop.f32.mrb[13].mxu1  ;;  %v773_v61 = vrot.slane %v762_v55, 4 }
 0x306   :  { %v772_v59 = vrot.slane %v693_v57, 4  ;;  %v774_v5 = vrot.slane %v764_v58, 4 }
 0x307   :  { %v779_v60 = vadd.f32 %v771_v56, %v2461_v18  ;;  %v781_v3 = vadd.f32 %v773_v61, %v2467_v29 }
 0x308   :  { %v780_v62 = vadd.f32 %v772_v59, %v2463_v20  ;;  %v782_v6 = vadd.f32 %v774_v5, %v2469_v30 }
 0x309   :  { %v783_v63 = vmul.f32 0.5, %v779_v60 }
 0x30a   :  { %v787_v1 = vmul.f32 0.5, %v780_v62  ;;  %v792_v8 = vmul.f32 0.5, %v782_v6 }
 0x30b   :  { %2158 = vtanh.f32 %v783_v63 }
 0x30c   :  { %2160 = vtanh.f32 %v787_v1 }
 0x30d   :  { %2162 = vtanh.f32 %v781_v3 }
 0x30e   :  { %2164 = vtanh.f32 %v792_v8 }
 0x315   :  { %v2159_v9 = vpop.eup %2158 }
 0x316   :  { %v2161_v10 = vpop.eup %2160  ;;  %v785_v12 = vmul.f32 0.5, %v2159_v9 }
 0x317   :  { %v789_v13 = vmul.f32 0.5, %v2161_v10  ;;  %v2163_v21 = vpop.eup %2162 }
 0x318   :  { %v786_v16 = vadd.f32 0.5, %v785_v12  ;;  %v2165_v32 = vpop.eup %2164 }
 0x319   :  { %v790_v22 = vadd.f32 0.5, %v789_v13  ;;  %v794_v33 = vmul.f32 0.5, %v2165_v32 }
 0x31a   :  { %v800_v26 = vmul.f32 %v2163_v21, %v786_v16 }
 0x31b   :  { %v799_v27 = vmul.f32 %v797_v25, %v790_v22  ;;  %v795_v36 = vadd.f32 0.5, %v794_v33 }
 0x31d   :  { %v801_v28 = vadd.f32 %v800_v26, %v799_v27 }
 0x31f   :  { %2166 = vtanh.f32 %v801_v28 }
 0x329   :  { %v2167_v37 = vpop.eup %2166 }
 0x32a   :  { %v803_v38 = vmul.f32 %v2167_v37, %v795_v36 }
 0x32c   :  { %v805_v40 = vrot.slane %v803_v38, 4 }
 0x32e   :  { %1822 = vmatmul.mubr.msk.f32.vlgmr.msra.gmra.mrb[6].mxu0 %vm271_vm1, %v805_v40  ;;  %1823 = vmatmul.mubr.msk.f32.vlgmr.msra.gmra.mrb[14].mxu1 %vm271_vm1, %v805_v40 }
 0x32f   :  { %1993 = vmatpush1.bf16.msra.mxu0 %v2372_v11  ;;  %2009 = vmatpush1.bf16.msra.mxu1 %v2392_v31 }
 0x330   :  { %1995 = vmatprep.subr.bf16.mxu0 %v2378_v15  ;;  %2011 = vmatprep.subr.bf16.mxu1 %v2397_v35 }
 0x331   :  { %1055 = vmatprep.mubr.f32.mxu0 %v2294_v0  ;;  %1126 = vmatprep.mubr.f32.mxu1 %v2294_v0 }
 0x333   :  { %1997 = vmatpush1.bf16.msra.mxu0 %v2382_v19  ;;  %2013 = vmatpush1.bf16.msra.mxu1 %v2404_v43 }
 0x334   :  { %1999 = vmatprep.subr.bf16.mxu0 %v2387_v24  ;;  %2015 = vmatprep.subr.bf16.mxu1 %v2411_v45 }
 0x337   :  { %2001 = vmatpush1.bf16.msra.mxu0 %v2395_v34  ;;  %2017 = vmatpush1.bf16.msra.mxu1 %v2416_v50 }
 0x338   :  { %2003 = vmatprep.subr.bf16.mxu0 %v2400_v39  ;;  %2019 = vmatprep.subr.bf16.mxu1 %v2421_v51 }
 0x33b   :  { %2005 = vmatpush1.bf16.msra.mxu0 %v2409_v44  ;;  %2021 = vmatpush1.bf16.msra.mxu1 %v2426_v54 }
 0x33c   :  { %2023 = vmatprep.subr.bf16.mxu0 %v2369_v7  ;;  %2039 = vmatprep.subr.bf16.mxu1 %v2385_v23 }
 0x401   :  { %v874_v41 = vpop.f32.mrb[6].mxu0  ;;  %v945_v42 = vpop.f32.mrb[14].mxu1 }
 0x402   :  { %v954_v46 = vrot.slane %v874_v41, 2  ;;  %v876_v47 = vpop.f32.mrb[7].mxu0  ;;  %v947_v48 = vpop.f32.mrb[15].mxu1  ;;  %v956_v53 = vrot.slane %v945_v42, 2 }
 0x403   :  { %v955_v49 = vrot.slane %v876_v47, 2  ;;  %v957_v59 = vrot.slane %v947_v48, 2 }
 0x404   :  { %v962_v52 = vadd.f32 %v954_v46, %v2461_v18  ;;  %v964_v58 = vadd.f32 %v956_v53, %v2467_v29 }
 0x405   :  { %v963_v55 = vadd.f32 %v955_v49, %v2463_v20  ;;  %v965_v60 = vadd.f32 %v957_v59, %v2469_v30  ;;  %v980_v20 = vrot.slane %v801_v28, 6 }
 0x406   :  { %v966_v56 = vmul.f32 0.5, %v962_v52 }
 0x407   :  { %v970_v57 = vmul.f32 0.5, %v963_v55  ;;  %v975_v61 = vmul.f32 0.5, %v965_v60 }
 0x408   :  { %2168 = vtanh.f32 %v966_v56 }
 0x409   :  { %2170 = vtanh.f32 %v970_v57 }
 0x40a   :  { %2172 = vtanh.f32 %v964_v58 }
 0x40b   :  { %2174 = vtanh.f32 %v975_v61 }
 0x412   :  { %v2169_v62 = vpop.eup %2168 }
 0x413   :  { %v2171_v63 = vpop.eup %2170  ;;  %v968_v1 = vmul.f32 0.5, %v2169_v62 }
 0x414   :  { %v972_v3 = vmul.f32 0.5, %v2171_v63  ;;  %v2173_v5 = vpop.eup %2172 }
 0x415   :  { %v969_v18 = vadd.f32 0.5, %v968_v1  ;;  %v2175_v29 = vpop.eup %2174 }
 0x416   :  { %v973_v6 = vadd.f32 0.5, %v972_v3  ;;  %v977_v12 = vmul.f32 0.5, %v2175_v29 }
 0x417   :  { %v983_v8 = vmul.f32 %v2173_v5, %v969_v18 }
 0x418   :  { %v982_v9 = vmul.f32 %v980_v20, %v973_v6  ;;  %v978_v13 = vadd.f32 0.5, %v977_v12 }
 0x41a   :  { %v984_v10 = vadd.f32 %v983_v8, %v982_v9 }
 0x41c   :  { %2176 = vtanh.f32 %v984_v10  ;;  %v1151_v53 = vrot.slane %v984_v10, 6 }
 0x426   :  { %v2177_v16 = vpop.eup %2176 }
 0x427   :  { %v986_v21 = vmul.f32 %v2177_v16, %v978_v13 }
 0x429   :  { %v988_v30 = vrot.slane %v986_v21, 6 }
 0x42b   :  { %1824 = vmatmul.mubr.msk.f32.vlgmr.msra.gmra.mrb[8].mxu0 %vm271_vm1, %v988_v30  ;;  %1825 = vmatmul.mubr.msk.f32.vlgmr.msra.gmra.mrb[16].mxu1 %vm271_vm1, %v988_v30 }
 0x42c   :  { %2025 = vmatpush1.bf16.msra.mxu0 %v2372_v11  ;;  %2041 = vmatpush1.bf16.msra.mxu1 %v2392_v31 }
 0x42d   :  { %2027 = vmatprep.subr.bf16.mxu0 %v2378_v15  ;;  %2043 = vmatprep.subr.bf16.mxu1 %v2397_v35 }
 0x42e   :  { %1225 = vmatprep.mubr.f32.mxu0 %v2294_v0  ;;  %1296 = vmatprep.mubr.f32.mxu1 %v2294_v0 }
 0x430   :  { %2029 = vmatpush1.bf16.msra.mxu0 %v2382_v19  ;;  %2045 = vmatpush1.bf16.msra.mxu1 %v2404_v43 }
 0x431   :  { %2031 = vmatprep.subr.bf16.mxu0 %v2387_v24  ;;  %2047 = vmatprep.subr.bf16.mxu1 %v2411_v45 }
 0x434   :  { %2033 = vmatpush1.bf16.msra.mxu0 %v2395_v34  ;;  %2049 = vmatpush1.bf16.msra.mxu1 %v2416_v50 }
 0x435   :  { %2035 = vmatprep.subr.bf16.mxu0 %v2400_v39  ;;  %2051 = vmatprep.subr.bf16.mxu1 %v2421_v51 }
 0x438   :  { %2037 = vmatpush1.bf16.msra.mxu0 %v2409_v44  ;;  %2053 = vmatpush1.bf16.msra.mxu1 %v2426_v54 }
 0x439   :  { %2055 = vmatprep.subr.bf16.mxu0 %v2369_v7  ;;  %2071 = vmatprep.subr.bf16.mxu1 %v2385_v23 }
 0x4fe   :  { %v1057_v22 = vpop.f32.mrb[8].mxu0  ;;  %v1128_v25 = vpop.f32.mrb[16].mxu1 }
 0x4ff   :  { %v1133_v26 = vadd.f32 %v1057_v22, %v2453_v2  ;;  %v1059_v27 = vpop.f32.mrb[9].mxu0  ;;  %v1130_v28 = vpop.f32.mrb[17].mxu1  ;;  %v1135_v37 = vadd.f32 %v1128_v25, %v2457_v14 }
 0x500   :  { %v1134_v32 = vadd.f32 %v1059_v27, %v2455_v4  ;;  %v1136_v38 = vadd.f32 %v1130_v28, %v2459_v17 }
 0x501   :  { %v1137_v33 = vmul.f32 0.5, %v1133_v26 }
 0x502   :  { %v1141_v36 = vmul.f32 0.5, %v1134_v32  ;;  %v1146_v40 = vmul.f32 0.5, %v1136_v38 }
 0x503   :  { %2178 = vtanh.f32 %v1137_v33 }
 0x504   :  { %2180 = vtanh.f32 %v1141_v36 }
 0x505   :  { %2182 = vtanh.f32 %v1135_v37 }
 0x506   :  { %2184 = vtanh.f32 %v1146_v40 }
 0x50d   :  { %v2179_v41 = vpop.eup %2178 }
 0x50e   :  { %v2181_v42 = vpop.eup %2180  ;;  %v1139_v46 = vmul.f32 0.5, %v2179_v41 }
 0x50f   :  { %v1143_v47 = vmul.f32 0.5, %v2181_v42  ;;  %v2183_v49 = vpop.eup %2182 }
 0x510   :  { %v1140_v48 = vadd.f32 0.5, %v1139_v46  ;;  %v2185_v58 = vpop.eup %2184 }
 0x511   :  { %v1144_v52 = vadd.f32 0.5, %v1143_v47  ;;  %v1148_v59 = vmul.f32 0.5, %v2185_v58 }
 0x512   :  { %v1154_v55 = vmul.f32 %v2183_v49, %v1140_v48 }
 0x513   :  { %v1153_v56 = vmul.f32 %v1151_v53, %v1144_v52  ;;  %v1149_v60 = vadd.f32 0.5, %v1148_v59 }
 0x515   :  { %v1155_v57 = vadd.f32 %v1154_v55, %v1153_v56 }
 0x517   :  { %2186 = vtanh.f32 %v1155_v57  ;;  %v1333_v28 = vrot.slane %v1155_v57, 6 }
 0x521   :  { %v2187_v61 = vpop.eup %2186 }
 0x522   :  { %v1157_v62 = vmul.f32 %v2187_v61, %v1149_v60 }
 0x524   :  { %1826 = vmatmul.mubr.msk.f32.vlgmr.msra.gmra.mrb[10].mxu0 %vm271_vm1, %v1157_v62  ;;  %1827 = vmatmul.mubr.msk.f32.vlgmr.msra.gmra.mrb[18].mxu1 %vm271_vm1, %v1157_v62 }
 0x525   :  { %2057 = vmatpush1.bf16.msra.mxu0 %v2372_v11  ;;  %2073 = vmatpush1.bf16.msra.mxu1 %v2392_v31 }
 0x526   :  { %2059 = vmatprep.subr.bf16.mxu0 %v2378_v15  ;;  %2075 = vmatprep.subr.bf16.mxu1 %v2397_v35 }
 0x527   :  { %1408 = vmatprep.mubr.f32.mxu0 %v2294_v0  ;;  %1479 = vmatprep.mubr.f32.mxu1 %v2294_v0 }
 0x529   :  { %2061 = vmatpush1.bf16.msra.mxu0 %v2382_v19  ;;  %2077 = vmatpush1.bf16.msra.mxu1 %v2404_v43 }
 0x52a   :  { %2063 = vmatprep.subr.bf16.mxu0 %v2387_v24  ;;  %2079 = vmatprep.subr.bf16.mxu1 %v2411_v45 }
 0x52d   :  { %2065 = vmatpush1.bf16.msra.mxu0 %v2395_v34  ;;  %2081 = vmatpush1.bf16.msra.mxu1 %v2416_v50 }
 0x52e   :  { %2067 = vmatprep.subr.bf16.mxu0 %v2400_v39  ;;  %2083 = vmatprep.subr.bf16.mxu1 %v2421_v51 }
 0x531   :  { %2069 = vmatpush1.bf16.msra.mxu0 %v2409_v44  ;;  %2085 = vmatpush1.bf16.msra.mxu1 %v2426_v54 }
 0x532   :  { %2087 = vmatprep.subr.bf16.mxu0 %v2369_v7  ;;  %2103 = vmatprep.subr.bf16.mxu1 %v2385_v23 }
 0x5f7   :  { %v1227_v63 = vpop.f32.mrb[10].mxu0  ;;  %v1298_v1 = vpop.f32.mrb[18].mxu1 }
 0x5f8   :  { %v1307_v3 = vrot.slane %v1227_v63, 6  ;;  %v1229_v18 = vpop.f32.mrb[11].mxu0  ;;  %v1300_v5 = vpop.f32.mrb[19].mxu1  ;;  %v1309_v8 = vrot.slane %v1298_v1, 6 }
 0x5f9   :  { %v1308_v6 = vrot.slane %v1229_v18, 6  ;;  %v1310_v13 = vrot.slane %v1300_v5, 6 }
 0x5fa   :  { %v1315_v20 = vadd.f32 %v1307_v3, %v2453_v2  ;;  %v1317_v12 = vadd.f32 %v1309_v8, %v2457_v14 }
 0x5fb   :  { %v1316_v9 = vadd.f32 %v1308_v6, %v2455_v4  ;;  %v1318_v7 = vadd.f32 %v1310_v13, %v2459_v17  ;;  %v1706_v6 = vld [vmem:[%s2666_s4] sm:$0xff] }
 0x5fc   :  { %v1319_v10 = vmul.f32 0.5, %v1315_v20  ;;  %v1707_v20 = vld [vmem:[%s2666_s4 + $0x8] sm:$0xff]  ;;  %v1710_v13 = vld [vmem:[%s2666_s4 + $0x20] sm:$0xff] }
 0x5fd   :  { %v1323_v29 = vmul.f32 0.5, %v1316_v9  ;;  %v1328_v23 = vmul.f32 0.5, %v1318_v7  ;;  %v2119_v8 = vpack.c.bf16 %v1707_v20, %v1706_v6  ;;  %v2295_v9 = vmov 0.0|0.0   ;;  %v1711_v7 = vld [vmem:[%s2666_s4 + $0x28] sm:$0xff] }
 0x5fe   :  { %2188 = vtanh.f32 %v1319_v10  ;;  %v1708_v10 = vld [vmem:[%s2666_s4 + $0x10] sm:$0xff] }
 0x5ff   :  { %2190 = vtanh.f32 %v1323_v29  ;;  %v1709_v29 = vld [vmem:[%s2666_s4 + $0x18] sm:$0xff] }
 0x600   :  { %2192 = vtanh.f32 %v1317_v12  ;;  %v2122_v12 = vpack.c.bf16 %v1709_v29, %v1708_v10 }
 0x601   :  { %2194 = vtanh.f32 %v1328_v23  ;;  %v2125_v23 = vpack.c.bf16 %v1711_v7, %v1710_v13 }
 0x608   :  { %v2189_v16 = vpop.eup %2188 }
 0x609   :  { %v2191_v21 = vpop.eup %2190  ;;  %v1321_v30 = vmul.f32 0.5, %v2189_v16  ;;  %v1712_v16 = vld [vmem:[%s2666_s4 + $0x30] sm:$0xff] }
 0x60a   :  { %v1325_v22 = vmul.f32 0.5, %v2191_v21  ;;  %v2193_v26 = vpop.eup %2192  ;;  %v1713_v21 = vld [vmem:[%s2666_s4 + $0x38] sm:$0xff] }
 0x60b   :  { %v1322_v25 = vadd.f32 0.5, %v1321_v30  ;;  %v2195_v37 = vpop.eup %2194  ;;  %v2128_v30 = vpack.c.bf16 %v1713_v21, %v1712_v16 }
 0x60c   :  { %v1326_v27 = vadd.f32 0.5, %v1325_v22  ;;  %v1330_v38 = vmul.f32 0.5, %v2195_v37 }
 0x60d   :  { %v1336_v32 = vmul.f32 %v2193_v26, %v1322_v25 }
 0x60e   :  { %v1335_v33 = vmul.f32 %v1333_v28, %v1326_v27  ;;  %v1331_v40 = vadd.f32 0.5, %v1330_v38 }
 0x610   :  { %v1337_v36 = vadd.f32 %v1336_v32, %v1335_v33 }
 0x612   :  { %2196 = vtanh.f32 %v1337_v36  ;;  %v1516_v58 = vrot.slane %v1337_v36, 6 }
 0x61c   :  { %v2197_v41 = vpop.eup %2196 }
 0x61d   :  { %v1339_v42 = vmul.f32 %v2197_v41, %v1331_v40 }
 0x61f   :  { %v1341_v46 = vrot.slane %v1339_v42, 2 }
 0x621   :  { %1828 = vmatmul.mubr.msk.f32.vlgmr.msra.gmra.mrb[12].mxu0 %vm271_vm1, %v1341_v46  ;;  %1829 = vmatmul.mubr.msk.f32.vlgmr.msra.gmra.mrb[20].mxu1 %vm271_vm1, %v1341_v46 }
 0x622   :  { %2089 = vmatpush1.bf16.msra.mxu0 %v2372_v11  ;;  %2105 = vmatpush1.bf16.msra.mxu1 %v2392_v31 }
 0x623   :  { %2091 = vmatprep.subr.bf16.mxu0 %v2378_v15  ;;  %2107 = vmatprep.subr.bf16.mxu1 %v2397_v35 }
 0x624   :  { %1591 = vmatprep.mubr.f32.mxu0 %v2294_v0  ;;  %1662 = vmatprep.mubr.f32.mxu1 %v2294_v0 }
 0x626   :  { %2093 = vmatpush1.bf16.msra.mxu0 %v2382_v19  ;;  %2109 = vmatpush1.bf16.msra.mxu1 %v2404_v43 }
 0x627   :  { %2095 = vmatprep.subr.bf16.mxu0 %v2387_v24  ;;  %2111 = vmatprep.subr.bf16.mxu1 %v2411_v45 }
 0x62a   :  { %2097 = vmatpush1.bf16.msra.mxu0 %v2395_v34  ;;  %2113 = vmatpush1.bf16.msra.mxu1 %v2416_v50 }
 0x62b   :  { %2099 = vmatprep.subr.bf16.mxu0 %v2400_v39  ;;  %2115 = vmatprep.subr.bf16.mxu1 %v2421_v51 }
 0x62e   :  { %2101 = vmatpush1.bf16.msra.mxu0 %v2409_v44  ;;  %2117 = vmatpush1.bf16.msra.mxu1 %v2426_v54 }
 0x62f   :  { %2118 = vmatprep.subr.bf16.mxu0 %v2295_v9 }
 0x6f4   :  { %v1410_v11 = vpop.f32.mrb[12].mxu0  ;;  %v1481_v15 = vpop.f32.mrb[20].mxu1 }
 0x6f5   :  { %v1490_v19 = vrot.slane %v1410_v11, 4  ;;  %v1412_v31 = vpop.f32.mrb[13].mxu0  ;;  %v1483_v35 = vpop.f32.mrb[21].mxu1  ;;  %v1492_v45 = vrot.slane %v1481_v15, 4 }
 0x6f6   :  { %v1491_v24 = vrot.slane %v1412_v31, 4  ;;  %v1493_v51 = vrot.slane %v1483_v35, 4 }
 0x6f7   :  { %v1498_v43 = vadd.f32 %v1490_v19, %v2453_v2  ;;  %v1500_v39 = vadd.f32 %v1492_v45, %v2457_v14 }
 0x6f8   :  { %v1499_v34 = vadd.f32 %v1491_v24, %v2455_v4  ;;  %v1501_v44 = vadd.f32 %v1493_v51, %v2459_v17 }
 0x6f9   :  { %v1502_v50 = vmul.f32 0.5, %v1498_v43 }
 0x6fa   :  { %v1506_v47 = vmul.f32 0.5, %v1499_v34  ;;  %v1511_v54 = vmul.f32 0.5, %v1501_v44  ;;  %v1833_v44 = vld [vmem:[%s2667_s5] ss:$0 sm:$0xff] }
 0x6fb   :  { %2198 = vtanh.f32 %v1502_v50 }
 0x6fc   :  { %2200 = vtanh.f32 %v1506_v47 }
 0x6fd   :  { %2202 = vtanh.f32 %v1500_v39 }
 0x6fe   :  { %2204 = vtanh.f32 %v1511_v54 }
 0x705   :  { %v2199_v48 = vpop.eup %2198 }
 0x706   :  { %v2201_v49 = vpop.eup %2200  ;;  %v1504_v52 = vmul.f32 0.5, %v2199_v48 }
 0x707   :  { %v1508_v53 = vmul.f32 0.5, %v2201_v49  ;;  %v2203_v56 = vpop.eup %2202 }
 0x708   :  { %v1505_v55 = vadd.f32 0.5, %v1504_v52  ;;  %v2205_v62 = vpop.eup %2204 }
 0x709   :  { %v1509_v57 = vadd.f32 0.5, %v1508_v53  ;;  %v1513_v63 = vmul.f32 0.5, %v2205_v62 }
 0x70a   :  { %v1519_v59 = vmul.f32 %v2203_v56, %v1505_v55 }
 0x70b   :  { %v1518_v60 = vmul.f32 %v1516_v58, %v1509_v57  ;;  %v1514_v1 = vadd.f32 0.5, %v1513_v63 }
 0x70d   :  { %v1520_v61 = vadd.f32 %v1519_v59, %v1518_v60 }
 0x70f   :  { %2206 = vtanh.f32 %v1520_v61 }
 0x719   :  { %v2207_v3 = vpop.eup %2206 }
 0x71a   :  { %v1522_v18 = vmul.f32 %v2207_v3, %v1514_v1 }
 0x71c   :  { %v1524_v5 = vrot.slane %v1522_v18, 4 }
 0x71e   :  { %1830 = vmatmul.mubr.msk.f32.vlgmr.msra.gmra.mrb[14].mxu0 %vm271_vm1, %v1524_v5  ;;  %1831 = vmatmul.mubr.msk.f32.vlgmr.msra.gmra.mrb[22].mxu1 %vm271_vm1, %v1524_v5 }
 0x71f   :  { %2120 = vmatpush3.bf16.msra.mxu0 %v2119_v8  ;;  %1859 = vmatprep.mubr.msk.f32.mxu0 %vm2296_vm2, %v2294_v0 }
 0x720   :  { %2121 = vmatprep.subr.bf16.mxu0 %v2295_v9 }
 0x723   :  { %2123 = vmatpush3.bf16.msra.mxu0 %v2122_v12 }
 0x724   :  { %2124 = vmatprep.subr.bf16.mxu0 %v2295_v9 }
 0x727   :  { %2126 = vmatpush3.bf16.msra.mxu0 %v2125_v23 }
 0x728   :  { %2127 = vmatprep.subr.bf16.mxu0 %v2295_v9 }
 0x72b   :  { %2129 = vmatpush3.bf16.msra.mxu0 %v2128_v30 }
 0x7f1   :  { %v1593_v22 = vpop.f32.mrb[14].mxu0  ;;  %v1664_v25 = vpop.f32.mrb[22].mxu1 }
 0x7f2   :  { %v1673_v26 = vrot.slane %v1593_v22, 2  ;;  %v1595_v27 = vpop.f32.mrb[15].mxu0  ;;  %v1666_v28 = vpop.f32.mrb[23].mxu1  ;;  %v1675_v36 = vrot.slane %v1664_v25, 2 }
 0x7f3   :  { %v1674_v32 = vrot.slane %v1595_v27, 2  ;;  %v1676_v42 = vrot.slane %v1666_v28, 2 }
 0x7f4   :  { %v1681_v33 = vadd.f32 %v1673_v26, %v2453_v2  ;;  %v1683_v41 = vadd.f32 %v1675_v36, %v2457_v14 }
 0x7f5   :  { %v1682_v37 = vadd.f32 %v1674_v32, %v2455_v4  ;;  %v1684_v0 = vadd.f32 %v1676_v42, %v2459_v17  ;;  %v1699_v4 = vrot.slane %v1520_v61, 6 }
 0x7f6   :  { %v1685_v38 = vmul.f32 0.5, %v1681_v33 }
 0x7f7   :  { %v1689_v40 = vmul.f32 0.5, %v1682_v37  ;;  %v1694_v46 = vmul.f32 0.5, %v1684_v0 }
 0x7f8   :  { %2208 = vtanh.f32 %v1685_v38 }
 0x7f9   :  { %2210 = vtanh.f32 %v1689_v40 }
 0x7fa   :  { %2212 = vtanh.f32 %v1683_v41 }
 0x7fb   :  { %2214 = vtanh.f32 %v1694_v46 }
 0x802   :  { %v2209_v11 = vpop.eup %2208 }
 0x803   :  { %v2211_v15 = vpop.eup %2210  ;;  %v1687_v19 = vmul.f32 0.5, %v2209_v11 }
 0x804   :  { %v1691_v31 = vmul.f32 0.5, %v2211_v15  ;;  %v2213_v35 = vpop.eup %2212 }
 0x805   :  { %v1688_v2 = vadd.f32 0.5, %v1687_v19  ;;  %v2215_v14 = vpop.eup %2214 }
 0x806   :  { %v1692_v24 = vadd.f32 0.5, %v1691_v31  ;;  %v1696_v50 = vmul.f32 0.5, %v2215_v14 }
 0x807   :  { %v1702_v43 = vmul.f32 %v2213_v35, %v1688_v2 }
 0x808   :  { %v1701_v45 = vmul.f32 %v1699_v4, %v1692_v24  ;;  %v1697_v47 = vadd.f32 0.5, %v1696_v50 }
 0x80a   :  { %v1703_v34 = vadd.f32 %v1702_v43, %v1701_v45 }
 0x80c   :  { %2216 = vtanh.f32 %v1703_v34 }
 0x816   :  { %v2217_v39 = vpop.eup %2216 }
 0x817   :  { %v1705_v51 = vmul.f32 %v2217_v39, %v1697_v47 }
 0x819   :  { %v1715_v17 = vrot.slane %v1705_v51, 6 }
 0x81b   :  { %1860 = vmatmul.mubr.msk.f32.vlgmr.msra.gmra.mrb[16].mxu0 %vm271_vm1, %v1715_v17 }
 0x8ee   :  { %v1784_v54 = vpop.f32.mrb[16].mxu0 }
 0x8ef   :  { %v1795_v48 = vadd.f32 %v1833_v44, %v1784_v54  ;;  %v1861_v49 = vpop.f32.mrb[17].mxu0 }
 0x8f1   :  { %1797 = vst.msk [vmem:[#allocation7] sm:$0x3] %vm1796_vm3, %v1795_v48 }
 0x8f2   :  { %2273 = shalt.err (!%p2270_p6)
}
 0x8f3   :  { %s2274_s22 = scalar_lea.hbm %s2668_s6, 32 }
 0x8f4   :  { %p2275_p7 = scmp.ne.s32.totalorder %s2668_s6, %s2274_s22  ;;  %p2278_p8 = scmp.lt.u32.totalorder %s2274_s22, %s2668_s6 }
 0x8f6   :  { %p2280_p9 = pnand %p2278_p8, %p2275_p7 }
 0x8f8   :  { %2283 = shalt.err (!%p2280_p9)
}
 0x8f9   :  { %1807 = dma.vmem_to_hbm [thread:$0]  %s1805_s1, 32, %s2668_s6, [#allocation4]  }
 0x8fa   :  { %2288 = dma.done.wait [#allocation4], 32  }
 0x8fb   :  { %2289 = vsyncadd [#allocation4], 4294967264 }
 0x8fc   :  { %1811 = vsyncpa [#allocation3], 1 }
 0x8fd   :  { %1812 = vsyncpa [#allocation6], 1 }
 0x8fe   :  { %1813 = vsyncpa [#allocation4], 1 }

</bundles_post_ra>
